<compile_context>
chip_gen: v7x
topology: tpu7x:2x2x1
jax: 0.10.0
libtpu: 0.0.40
codegen_flags: <defaults>
</compile_context>

<pallas_src>
import functools

import jax
import jax.numpy as jnp
from jax import lax
from jax.experimental import pallas as pl
from jax.experimental.pallas import tpu as pltpu


# ----------------------------------------------------------------------------
# In-kernel helpers
# ----------------------------------------------------------------------------
def _banded_conv(pad_ref, w_ref, b_ref, *, M, relu):
    """3x3 SAME conv over a lane-dense, row-zero-haloed padded buffer.

    pad_ref: VMEM (M+2, W*Cin) compute-dtype (bf16) buffer, images stacked
             along rows with 1-row zero halos.
    w_ref:   VMEM (3, W*Cin, W*Cout) banded weights (one matrix per dy);
             x-direction SAME padding is folded into the band structure.
    b_ref:   VMEM (1, W*Cout) f32 bias tiled along W.
    Returns f32 (M, W*Cout), lane-dense.
    """
    acc = jnp.dot(pad_ref[0:M, :], w_ref[0], preferred_element_type=jnp.float32)
    acc = acc + jnp.dot(pad_ref[1:M + 1, :], w_ref[1],
                        preferred_element_type=jnp.float32)
    acc = acc + jnp.dot(pad_ref[2:M + 2, :], w_ref[2],
                        preferred_element_type=jnp.float32)
    acc = acc + b_ref[...]
    if relu:
        acc = jnp.maximum(acc, 0.0)
    return acc


def _reblock_kernel(x_ref, w1a, b1a, w1b, b1b, w2a, b2a, w2b, b2b, o_ref,
                    pc, ph, *, H, W, C, C2, Nb):
    cd = pc.dtype                       # compute dtype (bf16 by default)
    HP = H + 2
    M = Nb * HP - 2                     # matmul row count per conv

    # Zero ONLY the halo rows each step (interior is fully rewritten before
    # every use).  Must be every step: with a "parallel" grid axis each core
    # starts on uninitialized scratch.
    zc = jnp.zeros((1, W * C), cd)
    zh = jnp.zeros((1, W * C2), cd)
    for i in range(Nb):
        base = i * HP
        pc[base:base + 1, :] = zc
        pc[base + H + 1:base + H + 2, :] = zc
        ph[base:base + 1, :] = zh
        ph[base + H + 1:base + H + 2, :] = zh

    # Stage input (cast to bf16 once) into the padded compute buffer.
    for i in range(Nb):
        base = i * HP
        pc[base + 1:base + 1 + H, :] = x_ref[i].astype(cd)

    # --- conv1: relu(conv C->C2) -> relu(conv C2->C); t = x + x1 ------------
    ya = _banded_conv(pc, w1a, b1a, M=M, relu=True)          # (M, W*C2) f32
    for i in range(Nb):
        base = i * HP
        ph[base + 1:base + 1 + H, :] = ya[base:base + H, :].astype(cd)
    x1 = _banded_conv(ph, w1b, b1b, M=M, relu=True)          # (M, W*C)  f32

    for i in range(Nb):
        base = i * HP
        t_i = x_ref[i] + x1[base:base + H, :]                # residual in f32
        pc[base + 1:base + 1 + H, :] = t_i.astype(cd)

    # --- conv2: relu(conv C->C2) -> conv C2->C; out = relu(x + x2) ----------
    yc = _banded_conv(pc, w2a, b2a, M=M, relu=True)          # (M, W*C2) f32
    for i in range(Nb):
        base = i * HP
        ph[base + 1:base + 1 + H, :] = yc[base:base + H, :].astype(cd)
    x2 = _banded_conv(ph, w2b, b2b, M=M, relu=False)         # (M, W*C)  f32

    for i in range(Nb):
        base = i * HP
        o_ref[i] = jnp.maximum(x_ref[i] + x2[base:base + H, :],
                               0.0).astype(o_ref.dtype)


# ----------------------------------------------------------------------------
# Host-side weight preprocessing (done ONCE per model, outside the kernel)
# ----------------------------------------------------------------------------
def _banded_weight(w_hwio, W):
    """(3, 3, Cin, Cout) HWIO kernel -> (3, W*Cin, W*Cout) banded matrices.

    M_dy[p*Cin + ci, w*Cout + co] = K[dy, p - w + 1, ci, co] for |p - w| <= 1.
    Out-of-range taps at the left/right edges simply have no band entry,
    which is exactly SAME zero-padding in x (so no column halo is needed).
    """
    KH, KW, _, _ = w_hwio.shape
    mats = []
    for dy in range(KH):
        m = None
        for dx in range(KW):
            sel = jnp.eye(W, W, k=1 - dx, dtype=w_hwio.dtype)   # p = w + dx - 1
            blk = jnp.kron(sel, w_hwio[dy, dx])                 # (W*Cin, W*Cout)
            m = blk if m is None else m + blk
        mats.append(m)
    return jnp.stack(mats)


def prepare_reblock_params(p, W, compute_dtype=jnp.bfloat16):
    """Build banded bf16 weights + f32 tiled biases once per model."""
    def prep(wk, bk):
        wb = _banded_weight(p[wk], W).astype(compute_dtype)
        bt = jnp.tile(p[bk], W).reshape(1, -1).astype(jnp.float32)
        return wb, bt

    out = {}
    for name in ("1a", "1b", "2a", "2b"):
        out["w" + name], out["b" + name] = prep("w" + name, "b" + name)
    return out


def _full_spec(a):
    zeros = (0,) * a.ndim
    return pl.BlockSpec(a.shape, lambda n, _z=zeros: _z)


def _pick_batch_tile(N, H, target_rows=256):
    """Largest divisor of N whose stacked row count targets >=256 MXU rows."""
    want = max(1, -(-target_rows // (H + 2)))
    best = 1
    for d in range(1, N + 1):
        if N % d == 0 and d <= want:
            best = d
    return best


# ----------------------------------------------------------------------------
# ReBlock: parameters + forward (mirrors the PyTorch module semantics).
# ----------------------------------------------------------------------------
def init_reblock_params(key, n_feats):
    half = n_feats // 2
    keys = jax.random.split(key, 8)

    def conv_init(kw, kb, cin, cout):
        # PyTorch convention weight (Cout, Cin, 3, 3) -> HWIO (3, 3, Cin, Cout)
        w = jax.random.normal(kw, (cout, cin, 3, 3), jnp.float32) * 0.1
        b = jax.random.normal(kb, (cout,), jnp.float32) * 0.1
        return jnp.transpose(w, (2, 3, 1, 0)), b

    p = {}
    p["w1a"], p["b1a"] = conv_init(keys[0], keys[1], n_feats, half)
    p["w1b"], p["b1b"] = conv_init(keys[2], keys[3], half, n_feats)
    p["w2a"], p["b2a"] = conv_init(keys[4], keys[5], n_feats, half)
    p["w2b"], p["b2b"] = conv_init(keys[6], keys[7], half, n_feats)
    return p


def reblock_apply(x2d, prepped, *, H, W, C, batch_tile=None):
    """Fused ReBlock on lane-dense activations. x2d: (N, H, W*C)."""
    N = x2d.shape[0]
    C2 = C // 2
    compute_dtype = prepped["w1a"].dtype
    Nb = batch_tile if batch_tile is not None else _pick_batch_tile(N, H)
    assert N % Nb == 0, (N, Nb)

    kernel = functools.partial(_reblock_kernel, H=H, W=W, C=C, C2=C2, Nb=Nb)

    return pl.pallas_call(
        kernel,
        out_shape=jax.ShapeDtypeStruct((N, H, W * C), x2d.dtype),
        grid=(N // Nb,),
        in_specs=[
            pl.BlockSpec((Nb, H, W * C), lambda n: (n, 0, 0)),
            _full_spec(prepped["w1a"]), _full_spec(prepped["b1a"]),
            _full_spec(prepped["w1b"]), _full_spec(prepped["b1b"]),
            _full_spec(prepped["w2a"]), _full_spec(prepped["b2a"]),
            _full_spec(prepped["w2b"]), _full_spec(prepped["b2b"]),
        ],
        out_specs=pl.BlockSpec((Nb, H, W * C), lambda n: (n, 0, 0)),
        scratch_shapes=[
            pltpu.VMEM((Nb * (H + 2), W * C), compute_dtype),   # x / t padded
            pltpu.VMEM((Nb * (H + 2), W * C2), compute_dtype),  # ya / yc padded
        ],
        compiler_params=pltpu.CompilerParams(
            dimension_semantics=("parallel",)),
    )(x2d, prepped["w1a"], prepped["b1a"], prepped["w1b"], prepped["b1b"],
      prepped["w2a"], prepped["b2a"], prepped["w2b"], prepped["b2b"])


def reblock_forward(x_nchw, p, *, compute_dtype=jnp.bfloat16, batch_tile=None):
    """ReBlock forward. x_nchw: (N, C, H, W) float32 (PyTorch layout)."""
    N, C, H, W = x_nchw.shape
    # NCHW -> NHWC -> lane-dense (N, H, W*C).  For stacked ReBlocks, keep the
    # lane-dense layout and call reblock_apply() directly instead.
    x2d = jnp.transpose(x_nchw, (0, 2, 3, 1)).reshape(N, H, W * C)
    prepped = prepare_reblock_params(p, W, compute_dtype=compute_dtype)
    out2d = reblock_apply(x2d, prepped, H=H, W=W, C=C, batch_tile=batch_tile)
    return jnp.transpose(out2d.reshape(N, H, W, C), (0, 3, 1, 2))


# ----------------------------------------------------------------------------
# Pure-JAX reference (for correctness check).
# ----------------------------------------------------------------------------
def _conv_ref(x, w, b):
    y = lax.conv_general_dilated(x, w, (1, 1), "SAME",
                                 dimension_numbers=("NHWC", "HWIO", "NHWC"))
    return y + b


def reblock_ref(x_nchw, p):
    x = jnp.transpose(x_nchw, (0, 2, 3, 1))
    ya = jax.nn.relu(_conv_ref(x, p["w1a"], p["b1a"]))
    x1 = jax.nn.relu(_conv_ref(ya, p["w1b"], p["b1b"]))
    t = x + x1
    yc = jax.nn.relu(_conv_ref(t, p["w2a"], p["b2a"]))
    x1b = _conv_ref(yc, p["w2b"], p["b2b"])
    out = jax.nn.relu(x + x1b)
    return jnp.transpose(out, (0, 3, 1, 2))


if __name__ == "__main__":
    key = jax.random.PRNGKey(0)
    kx, kp = jax.random.split(key)

    N, C, H, W = 2, 8, 16, 16          # n_feats = 8 (so n_feats // 2 = 4)
    x = jax.random.normal(kx, (N, C, H, W), jnp.float32)
    params = init_reblock_params(kp, C)

    out = jax.jit(reblock_forward)(x, params)   # bf16 MXU path by default
    out = jax.block_until_ready(out)

    ref = reblock_ref(x, params)
    assert out.shape == (N, C, H, W), out.shape
    max_err = float(jnp.max(jnp.abs(out - ref)))
    # bf16 weights/activations with f32 accumulation: relaxed tolerance vs the
    # f32 reference.
    assert jnp.allclose(out, ref, atol=1e-1, rtol=1e-1), max_err
    print("KERNEL_OK")
</pallas_src>

<mosaic_0001>
module attributes {stable_mosaic.version = 11 : i64} {
  func.func @_reblock_kernel(%arg0: i32, %arg1: memref<2x16x128xf32, #tpu.memory_space<vmem>>, %arg2: memref<3x128x64xbf16, #tpu.memory_space<vmem>>, %arg3: memref<1x64xf32, #tpu.memory_space<vmem>>, %arg4: memref<3x64x128xbf16, #tpu.memory_space<vmem>>, %arg5: memref<1x128xf32, #tpu.memory_space<vmem>>, %arg6: memref<3x128x64xbf16, #tpu.memory_space<vmem>>, %arg7: memref<1x64xf32, #tpu.memory_space<vmem>>, %arg8: memref<3x64x128xbf16, #tpu.memory_space<vmem>>, %arg9: memref<1x128xf32, #tpu.memory_space<vmem>>, %arg10: memref<2x16x128xf32, #tpu.memory_space<vmem>>, %arg11: memref<36x128xbf16, #tpu.memory_space<vmem>>, %arg12: memref<36x64xbf16, #tpu.memory_space<vmem>>) attributes {dimension_semantics = [#tpu.dimension_semantics<parallel>], iteration_bounds = array<i64: 1>, scalar_prefetch = 0 : i64, scratch_operands = 2 : i64, tpu.core_type = #tpu.core_type<tc>, window_params = [{transform_indices = @transform_0, window_bounds = array<i64: 2, 16, 128>}, {pipeline_mode = #tpu.pipeline_mode<synchronous>, transform_indices = @transform_1, window_bounds = array<i64: 3, 128, 64>}, {pipeline_mode = #tpu.pipeline_mode<synchronous>, transform_indices = @transform_2, window_bounds = array<i64: 1, 64>}, {pipeline_mode = #tpu.pipeline_mode<synchronous>, transform_indices = @transform_3, window_bounds = array<i64: 3, 64, 128>}, {pipeline_mode = #tpu.pipeline_mode<synchronous>, transform_indices = @transform_4, window_bounds = array<i64: 1, 128>}, {pipeline_mode = #tpu.pipeline_mode<synchronous>, transform_indices = @transform_5, window_bounds = array<i64: 3, 128, 64>}, {pipeline_mode = #tpu.pipeline_mode<synchronous>, transform_indices = @transform_6, window_bounds = array<i64: 1, 64>}, {pipeline_mode = #tpu.pipeline_mode<synchronous>, transform_indices = @transform_7, window_bounds = array<i64: 3, 64, 128>}, {pipeline_mode = #tpu.pipeline_mode<synchronous>, transform_indices = @transform_8, window_bounds = array<i64: 1, 128>}, {transform_indices = @transform_9, window_bounds = array<i64: 2, 16, 128>}]} {
    %cst = arith.constant 0.000000e+00 : bf16
    %0 = vector.broadcast %cst : bf16 to vector<1x128xbf16>
    %cst_0 = arith.constant 0.000000e+00 : bf16
    %1 = vector.broadcast %cst_0 : bf16 to vector<1x64xbf16>
    %c0 = arith.constant 0 : index
    %c0_1 = arith.constant 0 : index
    %2 = vector.load %arg11[%c0, %c0_1] : memref<36x128xbf16, #tpu.memory_space<vmem>>, vector<1x128xbf16>
    tpu.vector_store %arg11[%c0, %c0_1], %0 {strides = array<i32>} : memref<36x128xbf16, #tpu.memory_space<vmem>>, vector<1x128xbf16>,
    %c17 = arith.constant 17 : index
    %c0_2 = arith.constant 0 : index
    %3 = vector.load %arg11[%c17, %c0_2] : memref<36x128xbf16, #tpu.memory_space<vmem>>, vector<1x128xbf16>
    tpu.vector_store %arg11[%c17, %c0_2], %0 {strides = array<i32>} : memref<36x128xbf16, #tpu.memory_space<vmem>>, vector<1x128xbf16>,
    %c0_3 = arith.constant 0 : index
    %c0_4 = arith.constant 0 : index
    %4 = vector.load %arg12[%c0_3, %c0_4] : memref<36x64xbf16, #tpu.memory_space<vmem>>, vector<1x64xbf16>
    tpu.vector_store %arg12[%c0_3, %c0_4], %1 {strides = array<i32>} : memref<36x64xbf16, #tpu.memory_space<vmem>>, vector<1x64xbf16>,
    %c17_5 = arith.constant 17 : index
    %c0_6 = arith.constant 0 : index
    %5 = vector.load %arg12[%c17_5, %c0_6] : memref<36x64xbf16, #tpu.memory_space<vmem>>, vector<1x64xbf16>
    tpu.vector_store %arg12[%c17_5, %c0_6], %1 {strides = array<i32>} : memref<36x64xbf16, #tpu.memory_space<vmem>>, vector<1x64xbf16>,
    %c18 = arith.constant 18 : index
    %c0_7 = arith.constant 0 : index
    %6 = vector.load %arg11[%c18, %c0_7] : memref<36x128xbf16, #tpu.memory_space<vmem>>, vector<1x128xbf16>
    tpu.vector_store %arg11[%c18, %c0_7], %0 {strides = array<i32>} : memref<36x128xbf16, #tpu.memory_space<vmem>>, vector<1x128xbf16>,
    %c35 = arith.constant 35 : index
    %c0_8 = arith.constant 0 : index
    %7 = vector.load %arg11[%c35, %c0_8] : memref<36x128xbf16, #tpu.memory_space<vmem>>, vector<1x128xbf16>
    tpu.vector_store %arg11[%c35, %c0_8], %0 {strides = array<i32>} : memref<36x128xbf16, #tpu.memory_space<vmem>>, vector<1x128xbf16>,
    %c18_9 = arith.constant 18 : index
    %c0_10 = arith.constant 0 : index
    %8 = vector.load %arg12[%c18_9, %c0_10] : memref<36x64xbf16, #tpu.memory_space<vmem>>, vector<1x64xbf16>
    tpu.vector_store %arg12[%c18_9, %c0_10], %1 {strides = array<i32>} : memref<36x64xbf16, #tpu.memory_space<vmem>>, vector<1x64xbf16>,
    %c35_11 = arith.constant 35 : index
    %c0_12 = arith.constant 0 : index
    %9 = vector.load %arg12[%c35_11, %c0_12] : memref<36x64xbf16, #tpu.memory_space<vmem>>, vector<1x64xbf16>
    tpu.vector_store %arg12[%c35_11, %c0_12], %1 {strides = array<i32>} : memref<36x64xbf16, #tpu.memory_space<vmem>>, vector<1x64xbf16>,
    %c0_13 = arith.constant 0 : index
    %c0_14 = arith.constant 0 : index
    %c0_15 = arith.constant 0 : index
    %10 = vector.load %arg1[%c0_13, %c0_14, %c0_15] : memref<2x16x128xf32, #tpu.memory_space<vmem>>, vector<1x16x128xf32>
    %11 = vector.shape_cast %10 : vector<1x16x128xf32> to vector<16x128xf32>
    %12 = arith.truncf %11 : vector<16x128xf32> to vector<16x128xbf16>
    %c1 = arith.constant 1 : index
    %c0_16 = arith.constant 0 : index
    %13 = vector.load %arg11[%c1, %c0_16] : memref<36x128xbf16, #tpu.memory_space<vmem>>, vector<16x128xbf16>
    tpu.vector_store %arg11[%c1, %c0_16], %12 {strides = array<i32>} : memref<36x128xbf16, #tpu.memory_space<vmem>>, vector<16x128xbf16>,
    %c1_17 = arith.constant 1 : index
    %c0_18 = arith.constant 0 : index
    %c0_19 = arith.constant 0 : index
    %14 = vector.load %arg1[%c1_17, %c0_18, %c0_19] : memref<2x16x128xf32, #tpu.memory_space<vmem>>, vector<1x16x128xf32>
    %15 = vector.shape_cast %14 : vector<1x16x128xf32> to vector<16x128xf32>
    %16 = arith.truncf %15 : vector<16x128xf32> to vector<16x128xbf16>
    %c19 = arith.constant 19 : index
    %c0_20 = arith.constant 0 : index
    %17 = vector.load %arg11[%c19, %c0_20] : memref<36x128xbf16, #tpu.memory_space<vmem>>, vector<16x128xbf16>
    tpu.vector_store %arg11[%c19, %c0_20], %16 {strides = array<i32>} : memref<36x128xbf16, #tpu.memory_space<vmem>>, vector<16x128xbf16>,
    %c0_21 = arith.constant 0 : index
    %c0_22 = arith.constant 0 : index
    %18 = vector.load %arg11[%c0_21, %c0_22] : memref<36x128xbf16, #tpu.memory_space<vmem>>, vector<34x128xbf16>
    %c0_23 = arith.constant 0 : index
    %c0_24 = arith.constant 0 : index
    %c0_25 = arith.constant 0 : index
    %19 = vector.load %arg2[%c0_23, %c0_24, %c0_25] : memref<3x128x64xbf16, #tpu.memory_space<vmem>>, vector<1x128x64xbf16>
    %20 = vector.shape_cast %19 : vector<1x128x64xbf16> to vector<128x64xbf16>
    %cst_26 = arith.constant dense<0.000000e+00> : vector<34x64xf32>
    %21 = tpu.matmul %18, %20, %cst_26 {dimension_numbers = #tpu.dot_dimension_numbers<[1], [0], [0], [1], [0, 0, 1, 1], [], []>} : vector<34x128xbf16>, vector<128x64xbf16>, vector<34x64xf32> -> vector<34x64xf32>
    %c1_27 = arith.constant 1 : index
    %c0_28 = arith.constant 0 : index
    %22 = vector.load %arg11[%c1_27, %c0_28] : memref<36x128xbf16, #tpu.memory_space<vmem>>, vector<34x128xbf16>
    %c1_29 = arith.constant 1 : index
    %c0_30 = arith.constant 0 : index
    %c0_31 = arith.constant 0 : index
    %23 = vector.load %arg2[%c1_29, %c0_30, %c0_31] : memref<3x128x64xbf16, #tpu.memory_space<vmem>>, vector<1x128x64xbf16>
    %24 = vector.shape_cast %23 : vector<1x128x64xbf16> to vector<128x64xbf16>
    %cst_32 = arith.constant dense<0.000000e+00> : vector<34x64xf32>
    %25 = tpu.matmul %22, %24, %cst_32 {dimension_numbers = #tpu.dot_dimension_numbers<[1], [0], [0], [1], [0, 0, 1, 1], [], []>} : vector<34x128xbf16>, vector<128x64xbf16>, vector<34x64xf32> -> vector<34x64xf32>
    %26 = arith.addf %21, %25 : vector<34x64xf32>
    %c2 = arith.constant 2 : index
    %c0_33 = arith.constant 0 : index
    %27 = vector.load %arg11[%c2, %c0_33] : memref<36x128xbf16, #tpu.memory_space<vmem>>, vector<34x128xbf16>
    %c2_34 = arith.constant 2 : index
    %c0_35 = arith.constant 0 : index
    %c0_36 = arith.constant 0 : index
    %28 = vector.load %arg2[%c2_34, %c0_35, %c0_36] : memref<3x128x64xbf16, #tpu.memory_space<vmem>>, vector<1x128x64xbf16>
    %29 = vector.shape_cast %28 : vector<1x128x64xbf16> to vector<128x64xbf16>
    %cst_37 = arith.constant dense<0.000000e+00> : vector<34x64xf32>
    %30 = tpu.matmul %27, %29, %cst_37 {dimension_numbers = #tpu.dot_dimension_numbers<[1], [0], [0], [1], [0, 0, 1, 1], [], []>} : vector<34x128xbf16>, vector<128x64xbf16>, vector<34x64xf32> -> vector<34x64xf32>
    %31 = arith.addf %26, %30 : vector<34x64xf32>
    %c0_38 = arith.constant 0 : index
    %c0_39 = arith.constant 0 : index
    %32 = vector.load %arg3[%c0_38, %c0_39] : memref<1x64xf32, #tpu.memory_space<vmem>>, vector<1x64xf32>
    %33 = vector.broadcast %32 : vector<1x64xf32> to vector<34x64xf32>
    %34 = arith.addf %31, %33 : vector<34x64xf32>
    %cst_40 = arith.constant 0.000000e+00 : f32
    %35 = vector.broadcast %cst_40 : f32 to vector<34x64xf32>
    %36 = arith.maximumf %34, %35 : vector<34x64xf32>
    %37 = vector.extract_strided_slice %36 {offsets = [0, 0], sizes = [16, 64], strides = [1, 1]} : vector<34x64xf32> to vector<16x64xf32>
    %38 = arith.truncf %37 : vector<16x64xf32> to vector<16x64xbf16>
    %c1_41 = arith.constant 1 : index
    %c0_42 = arith.constant 0 : index
    %39 = vector.load %arg12[%c1_41, %c0_42] : memref<36x64xbf16, #tpu.memory_space<vmem>>, vector<16x64xbf16>
    tpu.vector_store %arg12[%c1_41, %c0_42], %38 {strides = array<i32>} : memref<36x64xbf16, #tpu.memory_space<vmem>>, vector<16x64xbf16>,
    %40 = vector.extract_strided_slice %36 {offsets = [18, 0], sizes = [16, 64], strides = [1, 1]} : vector<34x64xf32> to vector<16x64xf32>
    %41 = arith.truncf %40 : vector<16x64xf32> to vector<16x64xbf16>
    %c19_43 = arith.constant 19 : index
    %c0_44 = arith.constant 0 : index
    %42 = vector.load %arg12[%c19_43, %c0_44] : memref<36x64xbf16, #tpu.memory_space<vmem>>, vector<16x64xbf16>
    tpu.vector_store %arg12[%c19_43, %c0_44], %41 {strides = array<i32>} : memref<36x64xbf16, #tpu.memory_space<vmem>>, vector<16x64xbf16>,
    %c0_45 = arith.constant 0 : index
    %c0_46 = arith.constant 0 : index
    %43 = vector.load %arg12[%c0_45, %c0_46] : memref<36x64xbf16, #tpu.memory_space<vmem>>, vector<34x64xbf16>
    %c0_47 = arith.constant 0 : index
    %c0_48 = arith.constant 0 : index
    %c0_49 = arith.constant 0 : index
    %44 = vector.load %arg4[%c0_47, %c0_48, %c0_49] : memref<3x64x128xbf16, #tpu.memory_space<vmem>>, vector<1x64x128xbf16>
    %45 = vector.shape_cast %44 : vector<1x64x128xbf16> to vector<64x128xbf16>
    %cst_50 = arith.constant dense<0.000000e+00> : vector<34x128xf32>
    %46 = tpu.matmul %43, %45, %cst_50 {dimension_numbers = #tpu.dot_dimension_numbers<[1], [0], [0], [1], [0, 0, 1, 1], [], []>} : vector<34x64xbf16>, vector<64x128xbf16>, vector<34x128xf32> -> vector<34x128xf32>
    %c1_51 = arith.constant 1 : index
    %c0_52 = arith.constant 0 : index
    %47 = vector.load %arg12[%c1_51, %c0_52] : memref<36x64xbf16, #tpu.memory_space<vmem>>, vector<34x64xbf16>
    %c1_53 = arith.constant 1 : index
    %c0_54 = arith.constant 0 : index
    %c0_55 = arith.constant 0 : index
    %48 = vector.load %arg4[%c1_53, %c0_54, %c0_55] : memref<3x64x128xbf16, #tpu.memory_space<vmem>>, vector<1x64x128xbf16>
    %49 = vector.shape_cast %48 : vector<1x64x128xbf16> to vector<64x128xbf16>
    %cst_56 = arith.constant dense<0.000000e+00> : vector<34x128xf32>
    %50 = tpu.matmul %47, %49, %cst_56 {dimension_numbers = #tpu.dot_dimension_numbers<[1], [0], [0], [1], [0, 0, 1, 1], [], []>} : vector<34x64xbf16>, vector<64x128xbf16>, vector<34x128xf32> -> vector<34x128xf32>
    %51 = arith.addf %46, %50 : vector<34x128xf32>
    %c2_57 = arith.constant 2 : index
    %c0_58 = arith.constant 0 : index
    %52 = vector.load %arg12[%c2_57, %c0_58] : memref<36x64xbf16, #tpu.memory_space<vmem>>, vector<34x64xbf16>
    %c2_59 = arith.constant 2 : index
    %c0_60 = arith.constant 0 : index
    %c0_61 = arith.constant 0 : index
    %53 = vector.load %arg4[%c2_59, %c0_60, %c0_61] : memref<3x64x128xbf16, #tpu.memory_space<vmem>>, vector<1x64x128xbf16>
    %54 = vector.shape_cast %53 : vector<1x64x128xbf16> to vector<64x128xbf16>
    %cst_62 = arith.constant dense<0.000000e+00> : vector<34x128xf32>
    %55 = tpu.matmul %52, %54, %cst_62 {dimension_numbers = #tpu.dot_dimension_numbers<[1], [0], [0], [1], [0, 0, 1, 1], [], []>} : vector<34x64xbf16>, vector<64x128xbf16>, vector<34x128xf32> -> vector<34x128xf32>
    %56 = arith.addf %51, %55 : vector<34x128xf32>
    %c0_63 = arith.constant 0 : index
    %c0_64 = arith.constant 0 : index
    %57 = vector.load %arg5[%c0_63, %c0_64] : memref<1x128xf32, #tpu.memory_space<vmem>>, vector<1x128xf32>
    %58 = vector.broadcast %57 : vector<1x128xf32> to vector<34x128xf32>
    %59 = arith.addf %56, %58 : vector<34x128xf32>
    %cst_65 = arith.constant 0.000000e+00 : f32
    %60 = vector.broadcast %cst_65 : f32 to vector<34x128xf32>
    %61 = arith.maximumf %59, %60 : vector<34x128xf32>
    %c0_66 = arith.constant 0 : index
    %c0_67 = arith.constant 0 : index
    %c0_68 = arith.constant 0 : index
    %62 = vector.load %arg1[%c0_66, %c0_67, %c0_68] : memref<2x16x128xf32, #tpu.memory_space<vmem>>, vector<1x16x128xf32>
    %63 = vector.shape_cast %62 : vector<1x16x128xf32> to vector<16x128xf32>
    %64 = vector.extract_strided_slice %61 {offsets = [0, 0], sizes = [16, 128], strides = [1, 1]} : vector<34x128xf32> to vector<16x128xf32>
    %65 = arith.addf %63, %64 : vector<16x128xf32>
    %66 = arith.truncf %65 : vector<16x128xf32> to vector<16x128xbf16>
    %c1_69 = arith.constant 1 : index
    %c0_70 = arith.constant 0 : index
    %67 = vector.load %arg11[%c1_69, %c0_70] : memref<36x128xbf16, #tpu.memory_space<vmem>>, vector<16x128xbf16>
    tpu.vector_store %arg11[%c1_69, %c0_70], %66 {strides = array<i32>} : memref<36x128xbf16, #tpu.memory_space<vmem>>, vector<16x128xbf16>,
    %c1_71 = arith.constant 1 : index
    %c0_72 = arith.constant 0 : index
    %c0_73 = arith.constant 0 : index
    %68 = vector.load %arg1[%c1_71, %c0_72, %c0_73] : memref<2x16x128xf32, #tpu.memory_space<vmem>>, vector<1x16x128xf32>
    %69 = vector.shape_cast %68 : vector<1x16x128xf32> to vector<16x128xf32>
    %70 = vector.extract_strided_slice %61 {offsets = [18, 0], sizes = [16, 128], strides = [1, 1]} : vector<34x128xf32> to vector<16x128xf32>
    %71 = arith.addf %69, %70 : vector<16x128xf32>
    %72 = arith.truncf %71 : vector<16x128xf32> to vector<16x128xbf16>
    %c19_74 = arith.constant 19 : index
    %c0_75 = arith.constant 0 : index
    %73 = vector.load %arg11[%c19_74, %c0_75] : memref<36x128xbf16, #tpu.memory_space<vmem>>, vector<16x128xbf16>
    tpu.vector_store %arg11[%c19_74, %c0_75], %72 {strides = array<i32>} : memref<36x128xbf16, #tpu.memory_space<vmem>>, vector<16x128xbf16>,
    %c0_76 = arith.constant 0 : index
    %c0_77 = arith.constant 0 : index
    %74 = vector.load %arg11[%c0_76, %c0_77] : memref<36x128xbf16, #tpu.memory_space<vmem>>, vector<34x128xbf16>
    %c0_78 = arith.constant 0 : index
    %c0_79 = arith.constant 0 : index
    %c0_80 = arith.constant 0 : index
    %75 = vector.load %arg6[%c0_78, %c0_79, %c0_80] : memref<3x128x64xbf16, #tpu.memory_space<vmem>>, vector<1x128x64xbf16>
    %76 = vector.shape_cast %75 : vector<1x128x64xbf16> to vector<128x64xbf16>
    %cst_81 = arith.constant dense<0.000000e+00> : vector<34x64xf32>
    %77 = tpu.matmul %74, %76, %cst_81 {dimension_numbers = #tpu.dot_dimension_numbers<[1], [0], [0], [1], [0, 0, 1, 1], [], []>} : vector<34x128xbf16>, vector<128x64xbf16>, vector<34x64xf32> -> vector<34x64xf32>
    %c1_82 = arith.constant 1 : index
    %c0_83 = arith.constant 0 : index
    %78 = vector.load %arg11[%c1_82, %c0_83] : memref<36x128xbf16, #tpu.memory_space<vmem>>, vector<34x128xbf16>
    %c1_84 = arith.constant 1 : index
    %c0_85 = arith.constant 0 : index
    %c0_86 = arith.constant 0 : index
    %79 = vector.load %arg6[%c1_84, %c0_85, %c0_86] : memref<3x128x64xbf16, #tpu.memory_space<vmem>>, vector<1x128x64xbf16>
    %80 = vector.shape_cast %79 : vector<1x128x64xbf16> to vector<128x64xbf16>
    %cst_87 = arith.constant dense<0.000000e+00> : vector<34x64xf32>
    %81 = tpu.matmul %78, %80, %cst_87 {dimension_numbers = #tpu.dot_dimension_numbers<[1], [0], [0], [1], [0, 0, 1, 1], [], []>} : vector<34x128xbf16>, vector<128x64xbf16>, vector<34x64xf32> -> vector<34x64xf32>
    %82 = arith.addf %77, %81 : vector<34x64xf32>
    %c2_88 = arith.constant 2 : index
    %c0_89 = arith.constant 0 : index
    %83 = vector.load %arg11[%c2_88, %c0_89] : memref<36x128xbf16, #tpu.memory_space<vmem>>, vector<34x128xbf16>
    %c2_90 = arith.constant 2 : index
    %c0_91 = arith.constant 0 : index
    %c0_92 = arith.constant 0 : index
    %84 = vector.load %arg6[%c2_90, %c0_91, %c0_92] : memref<3x128x64xbf16, #tpu.memory_space<vmem>>, vector<1x128x64xbf16>
    %85 = vector.shape_cast %84 : vector<1x128x64xbf16> to vector<128x64xbf16>
    %cst_93 = arith.constant dense<0.000000e+00> : vector<34x64xf32>
    %86 = tpu.matmul %83, %85, %cst_93 {dimension_numbers = #tpu.dot_dimension_numbers<[1], [0], [0], [1], [0, 0, 1, 1], [], []>} : vector<34x128xbf16>, vector<128x64xbf16>, vector<34x64xf32> -> vector<34x64xf32>
    %87 = arith.addf %82, %86 : vector<34x64xf32>
    %c0_94 = arith.constant 0 : index
    %c0_95 = arith.constant 0 : index
    %88 = vector.load %arg7[%c0_94, %c0_95] : memref<1x64xf32, #tpu.memory_space<vmem>>, vector<1x64xf32>
    %89 = vector.broadcast %88 : vector<1x64xf32> to vector<34x64xf32>
    %90 = arith.addf %87, %89 : vector<34x64xf32>
    %cst_96 = arith.constant 0.000000e+00 : f32
    %91 = vector.broadcast %cst_96 : f32 to vector<34x64xf32>
    %92 = arith.maximumf %90, %91 : vector<34x64xf32>
    %93 = vector.extract_strided_slice %92 {offsets = [0, 0], sizes = [16, 64], strides = [1, 1]} : vector<34x64xf32> to vector<16x64xf32>
    %94 = arith.truncf %93 : vector<16x64xf32> to vector<16x64xbf16>
    %c1_97 = arith.constant 1 : index
    %c0_98 = arith.constant 0 : index
    %95 = vector.load %arg12[%c1_97, %c0_98] : memref<36x64xbf16, #tpu.memory_space<vmem>>, vector<16x64xbf16>
    tpu.vector_store %arg12[%c1_97, %c0_98], %94 {strides = array<i32>} : memref<36x64xbf16, #tpu.memory_space<vmem>>, vector<16x64xbf16>,
    %96 = vector.extract_strided_slice %92 {offsets = [18, 0], sizes = [16, 64], strides = [1, 1]} : vector<34x64xf32> to vector<16x64xf32>
    %97 = arith.truncf %96 : vector<16x64xf32> to vector<16x64xbf16>
    %c19_99 = arith.constant 19 : index
    %c0_100 = arith.constant 0 : index
    %98 = vector.load %arg12[%c19_99, %c0_100] : memref<36x64xbf16, #tpu.memory_space<vmem>>, vector<16x64xbf16>
    tpu.vector_store %arg12[%c19_99, %c0_100], %97 {strides = array<i32>} : memref<36x64xbf16, #tpu.memory_space<vmem>>, vector<16x64xbf16>,
    %c0_101 = arith.constant 0 : index
    %c0_102 = arith.constant 0 : index
    %99 = vector.load %arg12[%c0_101, %c0_102] : memref<36x64xbf16, #tpu.memory_space<vmem>>, vector<34x64xbf16>
    %c0_103 = arith.constant 0 : index
    %c0_104 = arith.constant 0 : index
    %c0_105 = arith.constant 0 : index
    %100 = vector.load %arg8[%c0_103, %c0_104, %c0_105] : memref<3x64x128xbf16, #tpu.memory_space<vmem>>, vector<1x64x128xbf16>
    %101 = vector.shape_cast %100 : vector<1x64x128xbf16> to vector<64x128xbf16>
    %cst_106 = arith.constant dense<0.000000e+00> : vector<34x128xf32>
    %102 = tpu.matmul %99, %101, %cst_106 {dimension_numbers = #tpu.dot_dimension_numbers<[1], [0], [0], [1], [0, 0, 1, 1], [], []>} : vector<34x64xbf16>, vector<64x128xbf16>, vector<34x128xf32> -> vector<34x128xf32>
    %c1_107 = arith.constant 1 : index
    %c0_108 = arith.constant 0 : index
    %103 = vector.load %arg12[%c1_107, %c0_108] : memref<36x64xbf16, #tpu.memory_space<vmem>>, vector<34x64xbf16>
    %c1_109 = arith.constant 1 : index
    %c0_110 = arith.constant 0 : index
    %c0_111 = arith.constant 0 : index
    %104 = vector.load %arg8[%c1_109, %c0_110, %c0_111] : memref<3x64x128xbf16, #tpu.memory_space<vmem>>, vector<1x64x128xbf16>
    %105 = vector.shape_cast %104 : vector<1x64x128xbf16> to vector<64x128xbf16>
    %cst_112 = arith.constant dense<0.000000e+00> : vector<34x128xf32>
    %106 = tpu.matmul %103, %105, %cst_112 {dimension_numbers = #tpu.dot_dimension_numbers<[1], [0], [0], [1], [0, 0, 1, 1], [], []>} : vector<34x64xbf16>, vector<64x128xbf16>, vector<34x128xf32> -> vector<34x128xf32>
    %107 = arith.addf %102, %106 : vector<34x128xf32>
    %c2_113 = arith.constant 2 : index
    %c0_114 = arith.constant 0 : index
    %108 = vector.load %arg12[%c2_113, %c0_114] : memref<36x64xbf16, #tpu.memory_space<vmem>>, vector<34x64xbf16>
    %c2_115 = arith.constant 2 : index
    %c0_116 = arith.constant 0 : index
    %c0_117 = arith.constant 0 : index
    %109 = vector.load %arg8[%c2_115, %c0_116, %c0_117] : memref<3x64x128xbf16, #tpu.memory_space<vmem>>, vector<1x64x128xbf16>
    %110 = vector.shape_cast %109 : vector<1x64x128xbf16> to vector<64x128xbf16>
    %cst_118 = arith.constant dense<0.000000e+00> : vector<34x128xf32>
    %111 = tpu.matmul %108, %110, %cst_118 {dimension_numbers = #tpu.dot_dimension_numbers<[1], [0], [0], [1], [0, 0, 1, 1], [], []>} : vector<34x64xbf16>, vector<64x128xbf16>, vector<34x128xf32> -> vector<34x128xf32>
    %112 = arith.addf %107, %111 : vector<34x128xf32>
    %c0_119 = arith.constant 0 : index
    %c0_120 = arith.constant 0 : index
    %113 = vector.load %arg9[%c0_119, %c0_120] : memref<1x128xf32, #tpu.memory_space<vmem>>, vector<1x128xf32>
    %114 = vector.broadcast %113 : vector<1x128xf32> to vector<34x128xf32>
    %115 = arith.addf %112, %114 : vector<34x128xf32>
    %c0_121 = arith.constant 0 : index
    %c0_122 = arith.constant 0 : index
    %c0_123 = arith.constant 0 : index
    %116 = vector.load %arg1[%c0_121, %c0_122, %c0_123] : memref<2x16x128xf32, #tpu.memory_space<vmem>>, vector<1x16x128xf32>
    %117 = vector.shape_cast %116 : vector<1x16x128xf32> to vector<16x128xf32>
    %118 = vector.extract_strided_slice %115 {offsets = [0, 0], sizes = [16, 128], strides = [1, 1]} : vector<34x128xf32> to vector<16x128xf32>
    %119 = arith.addf %117, %118 : vector<16x128xf32>
    %cst_124 = arith.constant 0.000000e+00 : f32
    %120 = vector.broadcast %cst_124 : f32 to vector<16x128xf32>
    %121 = arith.maximumf %119, %120 : vector<16x128xf32>
    %c0_125 = arith.constant 0 : index
    %c0_126 = arith.constant 0 : index
    %c0_127 = arith.constant 0 : index
    %122 = vector.load %arg10[%c0_125, %c0_126, %c0_127] : memref<2x16x128xf32, #tpu.memory_space<vmem>>, vector<1x16x128xf32>
    %123 = vector.shape_cast %122 : vector<1x16x128xf32> to vector<16x128xf32>
    %124 = vector.shape_cast %121 : vector<16x128xf32> to vector<1x16x128xf32>
    tpu.vector_store %arg10[%c0_125, %c0_126, %c0_127], %124 {strides = array<i32>} : memref<2x16x128xf32, #tpu.memory_space<vmem>>, vector<1x16x128xf32>,
    %c1_128 = arith.constant 1 : index
    %c0_129 = arith.constant 0 : index
    %c0_130 = arith.constant 0 : index
    %125 = vector.load %arg1[%c1_128, %c0_129, %c0_130] : memref<2x16x128xf32, #tpu.memory_space<vmem>>, vector<1x16x128xf32>
    %126 = vector.shape_cast %125 : vector<1x16x128xf32> to vector<16x128xf32>
    %127 = vector.extract_strided_slice %115 {offsets = [18, 0], sizes = [16, 128], strides = [1, 1]} : vector<34x128xf32> to vector<16x128xf32>
    %128 = arith.addf %126, %127 : vector<16x128xf32>
    %cst_131 = arith.constant 0.000000e+00 : f32
    %129 = vector.broadcast %cst_131 : f32 to vector<16x128xf32>
    %130 = arith.maximumf %128, %129 : vector<16x128xf32>
    %c1_132 = arith.constant 1 : index
    %c0_133 = arith.constant 0 : index
    %c0_134 = arith.constant 0 : index
    %131 = vector.load %arg10[%c1_132, %c0_133, %c0_134] : memref<2x16x128xf32, #tpu.memory_space<vmem>>, vector<1x16x128xf32>
    %132 = vector.shape_cast %131 : vector<1x16x128xf32> to vector<16x128xf32>
    %133 = vector.shape_cast %130 : vector<16x128xf32> to vector<1x16x128xf32>
    tpu.vector_store %arg10[%c1_132, %c0_133, %c0_134], %133 {strides = array<i32>} : memref<2x16x128xf32, #tpu.memory_space<vmem>>, vector<1x16x128xf32>,
    return
  }
  func.func @transform_0(%arg0: i32) -> (i32, i32, i32) {
    %c0_i32 = arith.constant 0 : i32
    %c0_i32_0 = arith.constant 0 : i32
    %c0_i32_1 = arith.constant 0 : i32
    return %arg0, %c0_i32, %c0_i32_0 : i32, i32, i32
  }
  func.func @transform_1(%arg0: i32) -> (i32, i32, i32) {
    %c0_i32 = arith.constant 0 : i32
    %c0_i32_0 = arith.constant 0 : i32
    %c0_i32_1 = arith.constant 0 : i32
    %c0_i32_2 = arith.constant 0 : i32
    return %c0_i32, %c0_i32_0, %c0_i32_1 : i32, i32, i32
  }
  func.func @transform_2(%arg0: i32) -> (i32, i32) {
    %c0_i32 = arith.constant 0 : i32
    %c0_i32_0 = arith.constant 0 : i32
    %c0_i32_1 = arith.constant 0 : i32
    return %c0_i32, %c0_i32_0 : i32, i32
  }
  func.func @transform_3(%arg0: i32) -> (i32, i32, i32) {
    %c0_i32 = arith.constant 0 : i32
    %c0_i32_0 = arith.constant 0 : i32
    %c0_i32_1 = arith.constant 0 : i32
    %c0_i32_2 = arith.constant 0 : i32
    return %c0_i32, %c0_i32_0, %c0_i32_1 : i32, i32, i32
  }
  func.func @transform_4(%arg0: i32) -> (i32, i32) {
    %c0_i32 = arith.constant 0 : i32
    %c0_i32_0 = arith.constant 0 : i32
    %c0_i32_1 = arith.constant 0 : i32
    return %c0_i32, %c0_i32_0 : i32, i32
  }
  func.func @transform_5(%arg0: i32) -> (i32, i32, i32) {
    %c0_i32 = arith.constant 0 : i32
    %c0_i32_0 = arith.constant 0 : i32
    %c0_i32_1 = arith.constant 0 : i32
    %c0_i32_2 = arith.constant 0 : i32
    return %c0_i32, %c0_i32_0, %c0_i32_1 : i32, i32, i32
  }
  func.func @transform_6(%arg0: i32) -> (i32, i32) {
    %c0_i32 = arith.constant 0 : i32
    %c0_i32_0 = arith.constant 0 : i32
    %c0_i32_1 = arith.constant 0 : i32
    return %c0_i32, %c0_i32_0 : i32, i32
  }
  func.func @transform_7(%arg0: i32) -> (i32, i32, i32) {
    %c0_i32 = arith.constant 0 : i32
    %c0_i32_0 = arith.constant 0 : i32
    %c0_i32_1 = arith.constant 0 : i32
    %c0_i32_2 = arith.constant 0 : i32
    return %c0_i32, %c0_i32_0, %c0_i32_1 : i32, i32, i32
  }
  func.func @transform_8(%arg0: i32) -> (i32, i32) {
    %c0_i32 = arith.constant 0 : i32
    %c0_i32_0 = arith.constant 0 : i32
    %c0_i32_1 = arith.constant 0 : i32
    return %c0_i32, %c0_i32_0 : i32, i32
  }
  func.func @transform_9(%arg0: i32) -> (i32, i32, i32) {
    %c0_i32 = arith.constant 0 : i32
    %c0_i32_0 = arith.constant 0 : i32
    %c0_i32_1 = arith.constant 0 : i32
    return %arg0, %c0_i32, %c0_i32_0 : i32, i32, i32
  }
}

</mosaic_0001>

<bundles_post_ra>
// kernel: tile.23
= control target key start
LH: loop header
LB: loop body
LE: loop exit
PB: predicated region body
PF: predicated region fallthrough
CT: control target
= control target key end

     0   :  { %s28_s0 = inlined_call_operand.vmem [shape: f32[4], index: 0, kind: input, shape index: {}]   ;;  %s29_s1 = inlined_call_operand.vmem [shape: f32[16,4], index: 1, kind: output, shape index: {}]  }
   0x1   :  { %v4_v0 = vld [vmem:[%s28_s0] ss:$0 sm:$0xff] }
   0x2   :  { %5 = vst [vmem:[%s29_s1] sm:$0xff] %v4_v0  ;;  %8 = vst [vmem:[%s29_s1 + $0x8] sm:$0xff] %v4_v0 }

// kernel: tile.28
= control target key start
LH: loop header
LB: loop body
LE: loop exit
PB: predicated region body
PF: predicated region fallthrough
CT: control target
= control target key end

     0   :  { %s28_s0 = inlined_call_operand.vmem [shape: f32[8], index: 0, kind: input, shape index: {}]   ;;  %s29_s1 = inlined_call_operand.vmem [shape: f32[16,8], index: 1, kind: output, shape index: {}]  }
   0x1   :  { %v4_v0 = vld [vmem:[%s28_s0] ss:$0 sm:$0xff] }
   0x2   :  { %5 = vst [vmem:[%s29_s1] sm:$0xff] %v4_v0  ;;  %8 = vst [vmem:[%s29_s1 + $0x8] sm:$0xff] %v4_v0 }

// kernel: tile.29
= control target key start
LH: loop header
LB: loop body
LE: loop exit
PB: predicated region body
PF: predicated region fallthrough
CT: control target
= control target key end

     0   :  { %s131_s10 = smov 120   ;;  %s132_s11 = smov 104   ;;  %vm3_vm0 = vcmask 64512   ;;  %vm9_vm1 = vcmask 1048512   ;;  %vm15_vm2 = vcmask 982912   ;;  %vm21_vm3 = vcmask 917312   ;;  %s207_s0 = inlined_call_operand.vmem [shape: f32[16,8], index: 0, kind: input, shape index: {}]   ;;  %s208_s1 = inlined_call_operand.vmem [shape: f32[1,128], index: 1, kind: output, shape index: {}]  }
   0x1   :  { %v101_v0 = vld [vmem:[%s207_s0 + $0xf] sm:$0x1]   ;;  %v103_v1 = vld [vmem:[%s207_s0 + $0xd] sm:$0x1]   ;;  %v102_v2 = vld [vmem:[%s207_s0 + $0xe] sm:$0x1]  }
   0x2   :  { %7 = vrot.lane.b32.xlu0 %v101_v0, %s131_s10  ;;  %19 = vrot.lane.b32.xlu1 %v103_v1, %s132_s11  ;;  %v104_v3 = vld [vmem:[%s207_s0 + $0xc] sm:$0x1]   ;;  %s133_s16 = smov 112   ;;  %s134_s17 = smov 96   ;;  %v105_v4 = vld [vmem:[%s207_s0 + $0xb] sm:$0x1]  }
   0x3   :  { %v106_v5 = vld [vmem:[%s207_s0 + $0xa] sm:$0x1]   ;;  %v2_v6 = vld [vmem:[%s207_s0] sm:$0x1]   ;;  %s135_s24 = smov 88   ;;  %s136_s25 = smov 80  }
   0x4   :  { %4 = vst.msk [vmem:[#allocation0] sm:$0x1] %vm3_vm0, %v2_v6   ;;  %v107_v7 = vld [vmem:[%s207_s0 + $0x9] sm:$0x1]   ;;  %v108_v8 = vld [vmem:[%s207_s0 + $0x8] sm:$0x1]  }
   0x5   :  { %s137_s30 = smov 72   ;;  %s138_s2 = smov 64   ;;  %v109_v9 = vld [vmem:[%s207_s0 + $0x7] sm:$0x1]   ;;  %v110_v10 = vld [vmem:[%s207_s0 + $0x6] sm:$0x1]  }
   0x6   :  { %13 = vrot.lane.b32.xlu0 %v102_v2, %s133_s16  ;;  %25 = vrot.lane.b32.xlu1 %v104_v3, %s134_s17  ;;  %s139_s7 = smov 56   ;;  %s140_s8 = smov 48   ;;  %v111_v11 = vld [vmem:[%s207_s0 + $0x5] sm:$0x1]   ;;  %v112_v12 = vld [vmem:[%s207_s0 + $0x4] sm:$0x1]  }
   0x7   :  { %s141_s13 = smov 40   ;;  %s142_s14 = smov 32   ;;  %v113_v13 = vld [vmem:[%s207_s0 + $0x3] sm:$0x1]   ;;  %v114_v14 = vld [vmem:[%s207_s0 + $0x2] sm:$0x1]  }
   0x8   :  { %s143_s19 = smov 24   ;;  %s144_s20 = smov 16   ;;  %v115_v15 = vld [vmem:[%s207_s0 + $0x1] sm:$0x1]   ;;  %vm27_vm4 = vcmask 851712   ;;  %vm33_vm5 = vcmask 786112  }
   0x9   :  { %s145_s0 = smov 8   ;;  %vm39_vm6 = vcmask 720512   ;;  %vm45_vm7 = vcmask 654912   ;;  %vm51_vm8 = vcmask 589312   ;;  %vm57_vm9 = vcmask 523712  }
   0xa   :  { %31 = vrot.lane.b32.xlu0 %v105_v4, %s135_s24  ;;  %37 = vrot.lane.b32.xlu1 %v106_v5, %s136_s25  ;;  %vm63_vm10 = vcmask 458112   ;;  %vm69_vm11 = vcmask 392512   ;;  %vm75_vm12 = vcmask 326912   ;;  %vm81_vm13 = vcmask 261312  }
   0xb   :  { %vm87_vm14 = vcmask 195712   ;;  %vm93_vm15 = vcmask 130112  }
   0xe   :  { %43 = vrot.lane.b32.xlu0 %v107_v7, %s137_s30  ;;  %49 = vrot.lane.b32.xlu1 %v108_v8, %s138_s2 }
  0x12   :  { %55 = vrot.lane.b32.xlu0 %v109_v9, %s139_s7  ;;  %61 = vrot.lane.b32.xlu1 %v110_v10, %s140_s8 }
  0x16   :  { %67 = vrot.lane.b32.xlu0 %v111_v11, %s141_s13  ;;  %73 = vrot.lane.b32.xlu1 %v112_v12, %s142_s14 }
  0x1a   :  { %79 = vrot.lane.b32.xlu0 %v113_v13, %s143_s19  ;;  %85 = vrot.lane.b32.xlu1 %v114_v14, %s144_s20 }
  0x1e   :  { %91 = vrot.lane.b32.xlu0 %v115_v15, %s145_s0 }
  0x74   :  { %v8_v16 = vpop.permute.xlu0 %7   ;;  %v20_v17 = vpop.permute.xlu1 %19  }
  0x75   :  { %10 = vst.msk [vmem:[#allocation0] sm:$0x1] %vm9_vm1, %v8_v16  }
  0x78   :  { %v14_v18 = vpop.permute.xlu0 %13   ;;  %v26_v19 = vpop.permute.xlu1 %25  }
  0x79   :  { %16 = vst.msk [vmem:[#allocation0] sm:$0x1] %vm15_vm2, %v14_v18  }
  0x7a   :  { %22 = vst.msk [vmem:[#allocation0] sm:$0x1] %vm21_vm3, %v20_v17  }
  0x7b   :  { %28 = vst.msk [vmem:[#allocation0] sm:$0x1] %vm27_vm4, %v26_v19  }
  0x7c   :  { %v32_v20 = vpop.permute.xlu0 %31   ;;  %v38_v21 = vpop.permute.xlu1 %37  }
  0x7d   :  { %34 = vst.msk [vmem:[#allocation0] sm:$0x1] %vm33_vm5, %v32_v20  }
  0x7e   :  { %40 = vst.msk [vmem:[#allocation0] sm:$0x1] %vm39_vm6, %v38_v21  }
  0x80   :  { %v44_v22 = vpop.permute.xlu0 %43   ;;  %v50_v23 = vpop.permute.xlu1 %49  }
  0x81   :  { %46 = vst.msk [vmem:[#allocation0] sm:$0x1] %vm45_vm7, %v44_v22  }
  0x82   :  { %52 = vst.msk [vmem:[#allocation0] sm:$0x1] %vm51_vm8, %v50_v23  }
  0x84   :  { %v56_v24 = vpop.permute.xlu0 %55   ;;  %v62_v25 = vpop.permute.xlu1 %61  }
  0x85   :  { %58 = vst.msk [vmem:[#allocation0] sm:$0x1] %vm57_vm9, %v56_v24  }
  0x86   :  { %64 = vst.msk [vmem:[#allocation0] sm:$0x1] %vm63_vm10, %v62_v25  }
  0x88   :  { %v68_v26 = vpop.permute.xlu0 %67   ;;  %v74_v27 = vpop.permute.xlu1 %73  }
  0x89   :  { %70 = vst.msk [vmem:[#allocation0] sm:$0x1] %vm69_vm11, %v68_v26  }
  0x8a   :  { %76 = vst.msk [vmem:[#allocation0] sm:$0x1] %vm75_vm12, %v74_v27  }
  0x8c   :  { %v80_v28 = vpop.permute.xlu0 %79   ;;  %v86_v29 = vpop.permute.xlu1 %85  }
  0x8d   :  { %82 = vst.msk [vmem:[#allocation0] sm:$0x1] %vm81_vm13, %v80_v28  }
  0x8e   :  { %88 = vst.msk [vmem:[#allocation0] sm:$0x1] %vm87_vm14, %v86_v29  }
  0x90   :  { %v92_v30 = vpop.permute.xlu0 %91  }
  0x91   :  { %94 = vst.msk [vmem:[#allocation0] sm:$0x1] %vm93_vm15, %v92_v30  }
  0x98   :  { %v98_v31 = vld [vmem:[#allocation0] sm:$0x1] }
  0x99   :  { %100 = vst [vmem:[%s208_s1] sm:$0x1] %v98_v31 }

// kernel: tile.24
= control target key start
LH: loop header
LB: loop body
LE: loop exit
PB: predicated region body
PF: predicated region fallthrough
CT: control target
= control target key end

     0   :  { %s131_s10 = smov 60   ;;  %s132_s11 = smov 52   ;;  %vm3_vm0 = vcmask 31744   ;;  %vm9_vm1 = vcmask 523744   ;;  %vm15_vm2 = vcmask 490944   ;;  %vm21_vm3 = vcmask 458144   ;;  %s207_s0 = inlined_call_operand.vmem [shape: f32[16,4], index: 0, kind: input, shape index: {}]   ;;  %s208_s1 = inlined_call_operand.vmem [shape: f32[1,64], index: 1, kind: output, shape index: {}]  }
   0x1   :  { %v101_v0 = vld [vmem:[%s207_s0 + $0xf] sm:$0x1]   ;;  %v103_v1 = vld [vmem:[%s207_s0 + $0xd] sm:$0x1]   ;;  %v102_v2 = vld [vmem:[%s207_s0 + $0xe] sm:$0x1]  }
   0x2   :  { %7 = vrot.lane.b32.xlu0 %v101_v0, %s131_s10  ;;  %19 = vrot.lane.b32.xlu1 %v103_v1, %s132_s11  ;;  %v104_v3 = vld [vmem:[%s207_s0 + $0xc] sm:$0x1]   ;;  %s133_s16 = smov 56   ;;  %s134_s17 = smov 48   ;;  %v105_v4 = vld [vmem:[%s207_s0 + $0xb] sm:$0x1]  }
   0x3   :  { %v106_v5 = vld [vmem:[%s207_s0 + $0xa] sm:$0x1]   ;;  %v2_v6 = vld [vmem:[%s207_s0] sm:$0x1]   ;;  %s135_s24 = smov 44   ;;  %s136_s25 = smov 40  }
   0x4   :  { %4 = vst.msk [vmem:[#allocation0] sm:$0x1] %vm3_vm0, %v2_v6   ;;  %v107_v7 = vld [vmem:[%s207_s0 + $0x9] sm:$0x1]   ;;  %v108_v8 = vld [vmem:[%s207_s0 + $0x8] sm:$0x1]  }
   0x5   :  { %s137_s30 = smov 36   ;;  %s138_s2 = smov 32   ;;  %v109_v9 = vld [vmem:[%s207_s0 + $0x7] sm:$0x1]   ;;  %v110_v10 = vld [vmem:[%s207_s0 + $0x6] sm:$0x1]  }
   0x6   :  { %13 = vrot.lane.b32.xlu0 %v102_v2, %s133_s16  ;;  %25 = vrot.lane.b32.xlu1 %v104_v3, %s134_s17  ;;  %s139_s7 = smov 28   ;;  %s140_s8 = smov 24   ;;  %v111_v11 = vld [vmem:[%s207_s0 + $0x5] sm:$0x1]   ;;  %v112_v12 = vld [vmem:[%s207_s0 + $0x4] sm:$0x1]  }
   0x7   :  { %s141_s13 = smov 20   ;;  %s142_s14 = smov 16   ;;  %v113_v13 = vld [vmem:[%s207_s0 + $0x3] sm:$0x1]   ;;  %v114_v14 = vld [vmem:[%s207_s0 + $0x2] sm:$0x1]  }
   0x8   :  { %s143_s19 = smov 12   ;;  %s144_s20 = smov 8   ;;  %v115_v15 = vld [vmem:[%s207_s0 + $0x1] sm:$0x1]   ;;  %vm27_vm4 = vcmask 425344   ;;  %vm33_vm5 = vcmask 392544  }
   0x9   :  { %s145_s0 = smov 4   ;;  %vm39_vm6 = vcmask 359744   ;;  %vm45_vm7 = vcmask 326944   ;;  %vm51_vm8 = vcmask 294144   ;;  %vm57_vm9 = vcmask 261344  }
   0xa   :  { %31 = vrot.lane.b32.xlu0 %v105_v4, %s135_s24  ;;  %37 = vrot.lane.b32.xlu1 %v106_v5, %s136_s25  ;;  %vm63_vm10 = vcmask 228544   ;;  %vm69_vm11 = vcmask 195744   ;;  %vm75_vm12 = vcmask 162944   ;;  %vm81_vm13 = vcmask 130144  }
   0xb   :  { %vm87_vm14 = vcmask 97344   ;;  %vm93_vm15 = vcmask 64544  }
   0xe   :  { %43 = vrot.lane.b32.xlu0 %v107_v7, %s137_s30  ;;  %49 = vrot.lane.b32.xlu1 %v108_v8, %s138_s2 }
  0x12   :  { %55 = vrot.lane.b32.xlu0 %v109_v9, %s139_s7  ;;  %61 = vrot.lane.b32.xlu1 %v110_v10, %s140_s8 }
  0x16   :  { %67 = vrot.lane.b32.xlu0 %v111_v11, %s141_s13  ;;  %73 = vrot.lane.b32.xlu1 %v112_v12, %s142_s14 }
  0x1a   :  { %79 = vrot.lane.b32.xlu0 %v113_v13, %s143_s19  ;;  %85 = vrot.lane.b32.xlu1 %v114_v14, %s144_s20 }
  0x1e   :  { %91 = vrot.lane.b32.xlu0 %v115_v15, %s145_s0 }
  0x74   :  { %v8_v16 = vpop.permute.xlu0 %7   ;;  %v20_v17 = vpop.permute.xlu1 %19  }
  0x75   :  { %10 = vst.msk [vmem:[#allocation0] sm:$0x1] %vm9_vm1, %v8_v16  }
  0x78   :  { %v14_v18 = vpop.permute.xlu0 %13   ;;  %v26_v19 = vpop.permute.xlu1 %25  }
  0x79   :  { %16 = vst.msk [vmem:[#allocation0] sm:$0x1] %vm15_vm2, %v14_v18  }
  0x7a   :  { %22 = vst.msk [vmem:[#allocation0] sm:$0x1] %vm21_vm3, %v20_v17  }
  0x7b   :  { %28 = vst.msk [vmem:[#allocation0] sm:$0x1] %vm27_vm4, %v26_v19  }
  0x7c   :  { %v32_v20 = vpop.permute.xlu0 %31   ;;  %v38_v21 = vpop.permute.xlu1 %37  }
  0x7d   :  { %34 = vst.msk [vmem:[#allocation0] sm:$0x1] %vm33_vm5, %v32_v20  }
  0x7e   :  { %40 = vst.msk [vmem:[#allocation0] sm:$0x1] %vm39_vm6, %v38_v21  }
  0x80   :  { %v44_v22 = vpop.permute.xlu0 %43   ;;  %v50_v23 = vpop.permute.xlu1 %49  }
  0x81   :  { %46 = vst.msk [vmem:[#allocation0] sm:$0x1] %vm45_vm7, %v44_v22  }
  0x82   :  { %52 = vst.msk [vmem:[#allocation0] sm:$0x1] %vm51_vm8, %v50_v23  }
  0x84   :  { %v56_v24 = vpop.permute.xlu0 %55   ;;  %v62_v25 = vpop.permute.xlu1 %61  }
  0x85   :  { %58 = vst.msk [vmem:[#allocation0] sm:$0x1] %vm57_vm9, %v56_v24  }
  0x86   :  { %64 = vst.msk [vmem:[#allocation0] sm:$0x1] %vm63_vm10, %v62_v25  }
  0x88   :  { %v68_v26 = vpop.permute.xlu0 %67   ;;  %v74_v27 = vpop.permute.xlu1 %73  }
  0x89   :  { %70 = vst.msk [vmem:[#allocation0] sm:$0x1] %vm69_vm11, %v68_v26  }
  0x8a   :  { %76 = vst.msk [vmem:[#allocation0] sm:$0x1] %vm75_vm12, %v74_v27  }
  0x8c   :  { %v80_v28 = vpop.permute.xlu0 %79   ;;  %v86_v29 = vpop.permute.xlu1 %85  }
  0x8d   :  { %82 = vst.msk [vmem:[#allocation0] sm:$0x1] %vm81_vm13, %v80_v28  }
  0x8e   :  { %88 = vst.msk [vmem:[#allocation0] sm:$0x1] %vm87_vm14, %v86_v29  }
  0x90   :  { %v92_v30 = vpop.permute.xlu0 %91  }
  0x91   :  { %94 = vst.msk [vmem:[#allocation0] sm:$0x1] %vm93_vm15, %v92_v30  }
  0x98   :  { %v98_v31 = vld [vmem:[#allocation0] sm:$0x1] }
  0x99   :  { %100 = vst [vmem:[%s208_s1] sm:$0x1] %v98_v31 }

// kernel: reblock_forward.1
= control target key start
LH: loop header
LB: loop body
LE: loop exit
PB: predicated region body
PF: predicated region fallthrough
CT: control target
= control target key end

     0   :  { %v2811_v0 = vmov 0.0   ;;  %vm2812_vm0 = vmmov 0   ;;  %vm33_vm1 = vcmask 1040384   ;;  %vm34_vm2 = vsmask.f32 256  ;;  %s3474_s1 = inlined_call_operand.vmem [shape: bf16[3,128,64], index: 1, kind: input, shape index: {}]   ;;  %s3475_s0 = inlined_call_operand.vmem [shape: f32[2,16,128], index: 0, kind: input, shape index: {}]   ;;  %s3476_s3 = inlined_call_operand.vmem [shape: bf16[3,64,128], index: 3, kind: input, shape index: {}]   ;;  %s3477_s2 = inlined_call_operand.vmem [shape: f32[1,64], index: 2, kind: input, shape index: {}]   ;;  %s3478_s5 = inlined_call_operand.vmem [shape: bf16[3,128,64], index: 5, kind: input, shape index: {}]   ;;  %s3479_s4 = inlined_call_operand.vmem [shape: f32[1,128], index: 4, kind: input, shape index: {}]   ;;  %s3480_s7 = inlined_call_operand.vmem [shape: bf16[3,64,128], index: 7, kind: input, shape index: {}]   ;;  %s3481_s6 = inlined_call_operand.vmem [shape: f32[1,64], index: 6, kind: input, shape index: {}]   ;;  %s3482_s8 = inlined_call_operand.vmem [shape: f32[1,128], index: 8, kind: input, shape index: {}]   ;;  %s3483_s9 = inlined_call_operand.vmem [shape: f32[2,16,128], index: 9, kind: output, shape index: {}]  }
   0x1   :  { %2425 = vmatprep.subr.bf16.mxu0 %v2811_v0  ;;  %2453 = vmatprep.subr.bf16.mxu1 %v2811_v0  ;;  %v2715_v1 = vld [vmem:[%s3474_s1 + $0x40] sm:$0xff]   ;;  %v2717_v3 = vld [vmem:[%s3474_s1 + $0x48] sm:$0xff]   ;;  %v2719_v5 = vld [vmem:[%s3474_s1 + $0x50] sm:$0xff]   ;;  %vm53_vm3 = vcmask 1041409   ;;  %vm39_vm5 = vsmask.f32 7938 }
   0x2   :  { %v2716_v2 = vld [vmem:[%s3474_s1] sm:$0xff]   ;;  %2441 = vmatprep.mubr.msk.bf16.mxu0 %vm2812_vm0, %v2811_v0  ;;  %2469 = vmatprep.mubr.msk.bf16.mxu1 %vm2812_vm0, %v2811_v0  ;;  %v2718_v4 = vld [vmem:[%s3474_s1 + $0x8] sm:$0xff]   ;;  %v2720_v6 = vld [vmem:[%s3474_s1 + $0x10] sm:$0xff]   ;;  %vm54_vm7 = vsmask.f32 1280  ;;  %vm103_vm9 = vcmask 1043456  }
   0x3   :  { %2426 = vmatpush3.bf16.msra.mxu0 %v2715_v1  ;;  %2454 = vmatpush3.bf16.msra.mxu1 %v2716_v2  ;;  %v2721_v7 = vld [vmem:[%s3474_s1 + $0x58] sm:$0xff]   ;;  %v2723_v9 = vld [vmem:[%s3474_s1 + $0x60] sm:$0xff]   ;;  %vm2909_vm4 = vmand %vm33_vm1, %vm34_vm2  ;;  %vm145_vm10 = vcmask 1043457   ;;  %vm81_vm11 = vsmask.f32 4368 }
   0x4   :  { %2427 = vmatprep.subr.bf16.mxu0 %v2811_v0  ;;  %2455 = vmatprep.subr.bf16.mxu1 %v2811_v0  ;;  %v2722_v8 = vld [vmem:[%s3474_s1 + $0x18] sm:$0xff]   ;;  %v2724_v10 = vld [vmem:[%s3474_s1 + $0x20] sm:$0xff]   ;;  %v41_v13 = vld [vmem:[#allocation2 + $0x8] sm:$0x1]  ;;  %vm59_vm12 = vsmask.f32 7942 }
   0x5   :  { %v36_v12 = vld [vmem:[#allocation2] sm:$0x1]  ;;  %vm2917_vm6 = vmand %vm33_vm1, %vm39_vm5  ;;  %v56_v16 = vld [vmem:[#allocation2 + $0x8] sm:$0x2]  ;;  %vm121_vm13 = vsmask.f32 5392 }
   0x6   :  { %v37_v14 = vsel %vm2909_vm4, 0, %v36_v12  ;;  %v73_v17 = vld [vmem:[%s3475_s0] sm:$0xff]  ;;  %v2725_v18 = vld [vmem:[%s3474_s1 + $0x68] sm:$0xff]   ;;  %v42_v19 = vsel %vm2917_vm6, 0, %v41_v13  ;;  %vm2931_vm8 = vmand %vm53_vm3, %vm54_vm7 }
   0x7   :  { %2428 = vmatpush3.bf16.msra.mxu0 %v2717_v3  ;;  %2456 = vmatpush3.bf16.msra.mxu1 %v2718_v4  ;;  %38 = vst [vmem:[#allocation2] sm:$0x1] %v37_v14  ;;  %v74_v21 = vld [vmem:[%s3475_s0 + $0x8] sm:$0xff]  ;;  %v2299_v22 = vpack.c.bf16 %v73_v17, %v73_v17  ;;  %43 = vst [vmem:[#allocation2 + $0x8] sm:$0x1] %v42_v19  ;;  %v57_v24 = vsel %vm2931_vm8, 0, %v56_v16 }
   0x8   :  { %2429 = vmatprep.subr.bf16.mxu0 %v2811_v0  ;;  %2457 = vmatprep.subr.bf16.mxu1 %v2811_v0  ;;  %v2726_v23 = vld [vmem:[%s3474_s1 + $0x28] sm:$0xff]   ;;  %v2300_v25 = vpack.c.bf16 %v74_v21, %v74_v21  ;;  %v2065_v26 = vld [vmem:[%s3475_s0 + $0x10] sm:$0xff]  ;;  %v2066_v27 = vld [vmem:[%s3475_s0 + $0x18] sm:$0xff]  ;;  %58 = vst [vmem:[#allocation2 + $0x8] sm:$0x2] %v57_v24  ;;  %vm151_vm8 = vcmask 1041408  }
   0x9   :  { %v2727_v28 = vld [vmem:[%s3474_s1 + $0x70] sm:$0xff]   ;;  %v84_v29 = vshrl.u32 %v2299_v22, 16  ;;  %v87_v30 = vshll.u32 %v2299_v22, 16  ;;  %v2301_v31 = vpack.c.bf16 %v2065_v26, %v2065_v26  ;;  %v2302_v32 = vpack.c.bf16 %v2066_v27, %v2066_v27  ;;  %vm2959_vm14 = vmor %vm34_vm2, %vm81_vm11  ;;  %v2729_v44 = vld [vmem:[%s3474_s1 + $0x78] sm:$0xff]  }
   0xa   :  { %v2728_v33 = vld [vmem:[%s3474_s1 + $0x30] sm:$0xff]   ;;  %v92_v34 = vshrl.u32 %v2300_v25, 16  ;;  %v95_v35 = vshll.u32 %v2300_v25, 16  ;;  %vm2966_vm15 = vmand %vm103_vm9, %vm39_vm5  ;;  %v2730_v50 = vld [vmem:[%s3474_s1 + $0x38] sm:$0xff]   ;;  %vm3485_vm11 = vcmask 1046528  }
   0xb   :  { %2430 = vmatpush3.bf16.msra.mxu0 %v2719_v5  ;;  %2458 = vmatpush3.bf16.msra.mxu1 %v2720_v6  ;;  %v86_v37 = vrot.slane %v84_v29, 7  ;;  %v124_v38 = vshrl.u32 %v2301_v31, 16  ;;  %v127_v39 = vshll.u32 %v2301_v31, 16  ;;  %v133_v40 = vshrl.u32 %v2302_v32, 16  ;;  %vm2976_vm1 = vmand %vm53_vm3, %vm59_vm12  ;;  %v61_v60 = vld [vmem:[#allocation2 + $0x10] sm:$0x2] }
   0xc   :  { %2431 = vmatprep.subr.bf16.mxu0 %v2811_v0  ;;  %2459 = vmatprep.subr.bf16.mxu1 %v2811_v0  ;;  %v94_v41 = vrot.slane %v92_v34, 7  ;;  %v136_v43 = vshll.u32 %v2302_v32, 16  ;;  %vm2985_vm6 = vmand %vm145_vm10, %vm59_vm12  ;;  %v62_v3 = vsel %vm2976_vm1, 0, %v61_v60  ;;  %vm3484_vm10 = vsmask.f32 7424  ;;  %v2733_v22 = vld [vmem:[%s3474_s1 + $0x80] sm:$0xff]  }
   0xd   :  { %v89_v45 = vor.u32 %v87_v30, %v86_v37  ;;  %v90_v46 = vrot.slane %v86_v37, 4  ;;  %v126_v47 = vrot.slane %v124_v38, 6  ;;  %v129_v48 = vrot.slane %v127_v39, 7  ;;  %vm2998_vm3 = vmor %vm54_vm7, %vm121_vm13  ;;  %63 = vst [vmem:[#allocation2 + $0x10] sm:$0x2] %v62_v3  ;;  %v2734_v26 = vld [vmem:[%s3474_s1 + $0x88] sm:$0xff]  }
   0xe   :  { %v97_v51 = vor.u32 %v95_v35, %v94_v41  ;;  %v99_v52 = vrot.slane %v94_v41, 4  ;;  %v105_v53 = vld [vmem:[#allocation2] sm:$0xf]  ;;  %v135_v54 = vrot.slane %v133_v40, 6  ;;  %v138_v55 = vrot.slane %v136_v43, 7  ;;  %vm3012_vm9 = vmand %vm151_vm8, %vm54_vm7  ;;  %v2735_v30 = vld [vmem:[%s3474_s1 + $0x90] sm:$0xff]  }
   0xf   :  { %2432 = vmatpush3.bf16.msra.mxu0 %v2721_v7  ;;  %2460 = vmatpush3.bf16.msra.mxu1 %v2722_v8  ;;  %v106_v57 = vsel %vm2966_vm15, %v89_v45, %v105_v53  ;;  %v109_v58 = vld [vmem:[#allocation2 + $0x8] sm:$0x1]  ;;  %v130_v59 = vor.u32 %v129_v48, %v126_v47  ;;  %v147_v2 = vld [vmem:[#allocation2 + $0x8] sm:$0xe]  ;;  %v2737_v34 = vld [vmem:[%s3474_s1 + $0x98] sm:$0xff]   ;;  %vm44_vm13 = vcmask 516096  }
  0x10   :  { %2433 = vmatprep.subr.bf16.mxu0 %v2811_v0  ;;  %2461 = vmatprep.subr.bf16.mxu1 %v2811_v0  ;;  %v98_v61 = vsel %vm2959_vm14, %v90_v46, %v97_v51  ;;  %107 = vst [vmem:[#allocation2] sm:$0xf] %v106_v57  ;;  %v110_v62 = vsel %vm2909_vm4, %v99_v52, %v109_v58  ;;  %v2738_v37 = vld [vmem:[%s3474_s1 + $0xa0] sm:$0xff]   ;;  %v2739_v38 = vld [vmem:[%s3474_s1 + $0xa8] sm:$0xff]   ;;  %v2741_v40 = vld [vmem:[%s3474_s1 + $0xb0] sm:$0xff]  }
  0x11   :  { %v139_v1 = vor.u32 %v138_v55, %v135_v54  ;;  %108 = vst [vmem:[#allocation2 + $0x4] sm:$0xf] %v98_v61  ;;  %111 = vst [vmem:[#allocation2 + $0x8] sm:$0x1] %v110_v62  ;;  %v131_v4 = vrot.slane %v130_v59, 4  ;;  %v148_v5 = vsel %vm2985_vm6, %v130_v59, %v147_v2  ;;  %v2742_v43 = vld [vmem:[%s3474_s1 + $0xb8] sm:$0xff]  }
  0x12   :  { %149 = vst [vmem:[#allocation2 + $0x8] sm:$0xe] %v148_v5  ;;  %v46_v49 = vld [vmem:[#allocation3] sm:$0x1]  ;;  %vm3079_vm1 = vmand %vm44_vm13, %vm34_vm2  ;;  %v50_v52 = vld [vmem:[#allocation3 + $0x8] sm:$0x1] }
  0x13   :  { %2434 = vmatpush3.bf16.msra.mxu0 %v2723_v9  ;;  %2462 = vmatpush3.bf16.msra.mxu1 %v2724_v10  ;;  %v140_v6 = vsel %vm2998_vm3, %v131_v4, %v139_v1  ;;  %v141_v7 = vrot.slane %v139_v1, 4  ;;  %v47_v51 = vsel %vm3079_vm1, 0, %v46_v49  ;;  %vm49_vm8 = vmand %vm44_vm13, %vm39_vm5  ;;  %v66_v54 = vld [vmem:[#allocation3 + $0x8] sm:$0x2]  ;;  %v70_v57 = vld [vmem:[#allocation3 + $0x10] sm:$0x2] }
  0x14   :  { %2435 = vmatprep.subr.bf16.mxu0 %v2811_v0  ;;  %2463 = vmatprep.subr.bf16.mxu1 %v2811_v0  ;;  %150 = vst [vmem:[#allocation2 + $0xc] sm:$0xf] %v140_v6  ;;  %v153_v12 = vld [vmem:[#allocation2 + $0x10] sm:$0x3]  ;;  %48 = vst [vmem:[#allocation3] sm:$0x1] %v47_v51 }
  0x15   :  { %v154_v14 = vsel %vm3012_vm9, %v141_v7, %v153_v12  ;;  %v51_v53 = vsel %vm49_vm8, 0, %v50_v52  ;;  %v2744_v59 = vld [vmem:[%s3476_s3 + $0x20] sm:$0xff]   ;;  %v2747_v61 = vld [vmem:[%s3476_s3 + $0x48] sm:$0xff]   ;;  %v2749_v1 = vld [vmem:[%s3476_s3 + $0x50] sm:$0xff]  }
  0x16   :  { %155 = vst [vmem:[#allocation2 + $0x10] sm:$0x3] %v154_v14  ;;  %52 = vst [vmem:[#allocation3 + $0x8] sm:$0x1] %v51_v53  ;;  %v2746_v60 = vld [vmem:[%s3476_s3 + $0x40] sm:$0xff]   ;;  %v2745_v62 = vld [vmem:[%s3476_s3 + $0x28] sm:$0xff]  }
  0x17   :  { %2436 = vmatpush3.bf16.msra.mxu0 %v2725_v18  ;;  %2464 = vmatpush3.bf16.msra.mxu1 %v2726_v23  ;;  %v156_v9 = vld [vmem:[#allocation2] sm:$0xf]  ;;  %v2748_v2 = vld [vmem:[%s3476_s3 + $0x30] sm:$0xff]   ;;  %v2750_v3 = vld [vmem:[%s3476_s3 + $0x38] sm:$0xff]  }
  0x18   :  { %2437 = vmatprep.subr.bf16.mxu0 %v2811_v0  ;;  %2465 = vmatprep.subr.bf16.mxu1 %v2811_v0  ;;  %v157_v10 = vld [vmem:[#allocation2 + $0x4] sm:$0xf]  ;;  %v449_v39 = vld [vmem:[#allocation2] sm:$0xe]  ;;  %v2751_v4 = vld [vmem:[%s3476_s3 + $0x58] sm:$0xff]  }
  0x19   :  { %v2085_v13 = vcombine.low %v156_v9, %v157_v10  ;;  %v2121_v41 = vcombine.low %v449_v39, %v157_v10  ;;  %v2809_v42 = vld [vmem:[%s3475_s0 + $0x10] sm:$0xff]  ;;  %v2779_v63 = vld [vmem:[%s3478_s5 + $0x80] sm:$0xff]  }
  0x1a   :  { %v2801_v36 = vld [vmem:[%s3480_s7] sm:$0xff]  }
  0x1b   :  { %2438 = vmatpush3.bf16.msra.mxu0 %v2727_v28  ;;  %2466 = vmatpush3.bf16.msra.mxu1 %v2728_v33  ;;  %v3018_v15 = vld [vmem:[#allocation2 + $0x8] sm:$0xff]   ;;  %v210_v16 = vshrl.u32 %v2085_v13, 16  ;;  %v212_v17 = vshll.u32 %v2085_v13, 16 }
  0x1c   :  { %2439 = vmatprep.subr.bf16.mxu0 %v2811_v0  ;;  %2467 = vmatprep.subr.bf16.mxu1 %v2811_v0  ;;  %v217_v19 = vshll.u32 %v3018_v15, 16  ;;  %v221_v23 = vshrl.u32 %v3018_v15, 16  ;;  %v472_v45 = vrot.slane %v3018_v15, 1 }
  0x1d   :  { %v214_v18 = vrot.slane %v212_v17, 1  ;;  %v2736_v25 = vld [vmem:[#allocation2 + $0x10] ss:$0 sps:$4 sm:$0x33]  }
  0x1e   :  { %v219_v21 = vrot.slane %v217_v19, 1  ;;  %v225_v28 = vshll.u32 %v2736_v25, 16  ;;  %v2740_v32 = vld [vmem:[#allocation2 + $0x10] ss:$0 sps:$4 sm:$0x11]   ;;  %v229_v33 = vshrl.u32 %v2736_v25, 16 }
  0x1f   :  { %2440 = vmatpush3.bf16.msra.mxu0 %v2729_v44  ;;  %2468 = vmatpush3.bf16.msra.mxu1 %v2730_v50  ;;  %v215_v20 = vor.u32 %v214_v18, %v210_v16  ;;  %v471_v44 = vrot.slane %v2121_v41, 1  ;;  %v474_v47 = vrot.slane %v2736_v25, 1 }
  0x20   :  { %2481 = vmatprep.subr.bf16.mxu0 %v2811_v0  ;;  %2509 = vmatprep.subr.bf16.mxu1 %v2811_v0  ;;  %v223_v27 = vor.u32 %v221_v23, %v219_v21  ;;  %v227_v29 = vrot.slane %v225_v28, 1 }
  0x21   :  { %v220_v24 = vsel %vm3484_vm10, %v215_v20, %v219_v21  ;;  %v473_v46 = vsel %vm3485_vm11, %v471_v44, %v472_v45  ;;  %v475_v48 = vsel %vm3485_vm11, %v472_v45, %v474_v47 }
  0x22   :  { %2470 = vmatmul.mubr.bf16.vlgmr.msra.gmra.mrb[0].mxu1 %v2085_v13  ;;  %2442 = vmatmul.mubr.bf16.vlgmr.msra.gmra.mrb[0].mxu0 %v220_v24  ;;  %v228_v31 = vsel %vm3484_vm10, %v223_v27, %v227_v29  ;;  %v231_v35 = vor.u32 %v229_v33, %v227_v29  ;;  %vm64_vm10 = vcmask 517121  }
  0x23   :  { %2473 = vmatprep.mubr.msk.bf16.mxu1 %vm2812_vm0, %v2811_v0  ;;  %2482 = vmatpush3.bf16.msra.mxu0 %v2733_v22  ;;  %vm65_vm11 = vmand %vm64_vm10, %vm54_vm7 }
  0x24   :  { %2445 = vmatprep.mubr.msk.bf16.mxu0 %vm2812_vm0, %v2811_v0  ;;  %2483 = vmatprep.subr.bf16.mxu0 %v2811_v0  ;;  %v67_v55 = vsel %vm65_vm11, 0, %v66_v54  ;;  %vm69_vm2 = vmand %vm64_vm10, %vm59_vm12  ;;  %vm631_vm10 = vcmask 519168  }
  0x25   :  { %68 = vst [vmem:[#allocation3 + $0x8] sm:$0x2] %v67_v55  ;;  %v71_v58 = vsel %vm69_vm2, 0, %v70_v57  ;;  %2510 = vmatpush3.bf16.msra.mxu1 %v2744_v59  ;;  %vm3125_vm11 = vmand %vm631_vm10, %vm39_vm5  ;;  %vm679_vm5 = vcmask 519169   ;;  %vm773_vm2 = vcmask 523264  }
  0x26   :  { %72 = vst [vmem:[#allocation3 + $0x10] sm:$0x2] %v71_v58  ;;  %2511 = vmatprep.subr.bf16.mxu1 %v2811_v0  ;;  %vm3137_vm13 = vmand %vm679_vm5, %vm59_vm12  ;;  %vm685_vm12 = vcmask 517120   ;;  %vm3513_vm5 = vsmask.f32 7424 }
  0x27   :  { %2484 = vmatpush3.bf16.msra.mxu0 %v2734_v26  ;;  %vm3147_vm8 = vmand %vm685_vm12, %vm54_vm7  ;;  %vm3512_vm7 = vcmask 1046528  }
  0x28   :  { %2485 = vmatprep.subr.bf16.mxu0 %v2811_v0  ;;  %vm3514_vm12 = vmmov %vm3512_vm7 }
  0x29   :  { %2512 = vmatpush3.bf16.msra.mxu1 %v2745_v62 }
  0x2a   :  { %2474 = vmatmul.mubr.bf16.gmra.mrb[4].mxu1 %v3018_v15  ;;  %2446 = vmatmul.mubr.bf16.gmra.mrb[4].mxu0 %v228_v31 }
  0x2b   :  { %2477 = vmatprep.mubr.msk.bf16.mxu1 %vm2812_vm0, %v2811_v0  ;;  %2486 = vmatpush3.bf16.msra.mxu0 %v2735_v30 }
  0x2c   :  { %2449 = vmatprep.mubr.msk.bf16.mxu0 %vm2812_vm0, %v2811_v0  ;;  %2487 = vmatprep.subr.bf16.mxu0 %v2811_v0 }
  0x2d   :  { %2513 = vmatprep.subr.bf16.mxu1 %v2811_v0 }
  0x2e   :  { %2514 = vmatpush3.bf16.msra.mxu1 %v2748_v2  ;;  %v633_v2 = vld [vmem:[#allocation3] sm:$0xf] }
  0x2f   :  { %2488 = vmatpush3.bf16.msra.mxu0 %v2737_v34  ;;  %2515 = vmatprep.subr.bf16.mxu1 %v2811_v0 }
  0x30   :  { %2489 = vmatprep.subr.bf16.mxu0 %v2811_v0 }
  0x32   :  { %2478 = vmatmul.mubr.bf16.gmra.mrb[8].mxu1 %v2740_v32  ;;  %2450 = vmatmul.mubr.bf16.gmra.mrb[8].mxu0 %v231_v35 }
  0x33   :  { %2517 = vmatprep.mubr.msk.bf16.mxu1 %vm2812_vm0, %v2811_v0  ;;  %2490 = vmatpush3.bf16.msra.mxu0 %v2738_v37 }
  0x34   :  { %2497 = vmatprep.mubr.msk.bf16.mxu0 %vm2812_vm0, %v2811_v0  ;;  %2491 = vmatprep.subr.bf16.mxu0 %v2811_v0 }
  0x35   :  { %2516 = vmatpush3.bf16.msra.mxu1 %v2750_v3 }
  0x36   :  { %2529 = vmatprep.subr.bf16.mxu1 %v2811_v0 }
  0x37   :  { %2492 = vmatpush3.bf16.msra.mxu0 %v2739_v38  ;;  %v2130_v38 = vld [vmem:[%s3477_s2] ss:$0 sm:$0xff] }
  0x38   :  { %2493 = vmatprep.subr.bf16.mxu0 %v2811_v0 }
  0x3b   :  { %2494 = vmatpush3.bf16.msra.mxu0 %v2741_v40 }
  0x3c   :  { %2495 = vmatprep.subr.bf16.mxu0 %v2811_v0 }
  0x3f   :  { %2496 = vmatpush3.bf16.msra.mxu0 %v2742_v43 }
  0x40   :  { %2549 = vmatprep.subr.bf16.mxu0 %v2811_v0 }
  0x42   :  { %2498 = vmatmul.mubr.bf16.vlgmr.msra.gmra.mrb[12].mxu0 %v473_v46 }
  0x43   :  { %2501 = vmatprep.mubr.msk.bf16.mxu0 %vm2812_vm0, %v2811_v0  ;;  %2550 = vmatpush3.bf16.msra.mxu0 %v2746_v60 }
  0x44   :  { %2551 = vmatprep.subr.bf16.mxu0 %v2811_v0 }
  0x47   :  { %2552 = vmatpush3.bf16.msra.mxu0 %v2747_v61 }
  0x48   :  { %2553 = vmatprep.subr.bf16.mxu0 %v2811_v0 }
  0x4a   :  { %2502 = vmatmul.mubr.bf16.gmra.mrb[16].mxu0 %v475_v48 }
  0x4b   :  { %2505 = vmatprep.mubr.msk.bf16.mxu0 %vm2812_vm0, %v2811_v0  ;;  %2554 = vmatpush3.bf16.msra.mxu0 %v2749_v1 }
  0x4c   :  { %2555 = vmatprep.subr.bf16.mxu0 %v2811_v0 }
  0x4f   :  { %2556 = vmatpush3.bf16.msra.mxu0 %v2751_v4 }
  0x50   :  { %2597 = vmatprep.subr.bf16.mxu0 %v2811_v0 }
  0x52   :  { %2506 = vmatmul.mubr.bf16.gmra.mrb[20].mxu0 %v474_v47 }
  0x53   :  { %2557 = vmatprep.mubr.msk.bf16.mxu0 %vm2812_vm0, %v2811_v0 }
  0xf5   :  { %v427_v5 = vpop.f32.mrb[0].mxu1  ;;  %v317_v10 = vpop.f32.mrb[0].mxu0 }
  0xf6   :  { %v2471_v6 = vpop.f32.mrb[1].mxu1  ;;  %v428_v12 = vadd.f32 %v427_v5, %v317_v10  ;;  %v2443_v13 = vpop.f32.mrb[1].mxu0  ;;  %v638_v10 = vld [vmem:[#allocation3 + $0x8] sm:$0x1] }
  0xf7   :  { %v430_v7 = vpop.f32.mrb[2].mxu1  ;;  %v320_v14 = vpop.f32.mrb[2].mxu0 }
  0xf8   :  { %v2472_v9 = vpop.f32.mrb[3].mxu1  ;;  %v431_v16 = vadd.f32 %v430_v7, %v320_v14  ;;  %v2444_v17 = vpop.f32.mrb[3].mxu0 }
  0xfd   :  { %v435_v15 = vpop.f32.mrb[4].mxu1  ;;  %v325_v21 = vpop.f32.mrb[4].mxu0 }
  0xfe   :  { %v2475_v18 = vpop.f32.mrb[5].mxu1  ;;  %v2447_v22 = vpop.f32.mrb[5].mxu0  ;;  %v436_v23 = vadd.f32 %v435_v15, %v325_v21 }
  0xff   :  { %v438_v19 = vpop.f32.mrb[6].mxu1  ;;  %v328_v24 = vpop.f32.mrb[6].mxu0 }
 0x100   :  { %v2476_v20 = vpop.f32.mrb[7].mxu1  ;;  %v2448_v26 = vpop.f32.mrb[7].mxu0  ;;  %v439_v27 = vadd.f32 %v438_v19, %v328_v24 }
 0x105   :  { %v443_v25 = vpop.f32.mrb[8].mxu1  ;;  %v333_v31 = vpop.f32.mrb[8].mxu0 }
 0x106   :  { %v2479_v28 = vpop.f32.mrb[9].mxu1  ;;  %v2451_v32 = vpop.f32.mrb[9].mxu0  ;;  %v444_v33 = vadd.f32 %v443_v25, %v333_v31 }
 0x107   :  { %v446_v29 = vpop.f32.mrb[10].mxu1  ;;  %v336_v34 = vpop.f32.mrb[10].mxu0 }
 0x108   :  { %v2480_v30 = vpop.f32.mrb[11].mxu1  ;;  %v2452_v35 = vpop.f32.mrb[11].mxu0 }
 0x109   :  { %v681_v30 = vld [vmem:[#allocation3 + $0x8] sm:$0xe] }
 0x115   :  { %v561_v37 = vpop.f32.mrb[12].mxu0 }
 0x116   :  { %v583_v39 = vadd.f32 %v561_v37, %v428_v12  ;;  %v2499_v40 = vpop.f32.mrb[13].mxu0 }
 0x117   :  { %v564_v41 = vpop.f32.mrb[14].mxu0 }
 0x118   :  { %v595_v43 = vadd.f32 %v2130_v38, %v583_v39  ;;  %v584_v44 = vadd.f32 %v564_v41, %v431_v16  ;;  %v2500_v45 = vpop.f32.mrb[15].mxu0 }
 0x11a   :  { %v600_v46 = vmax.f32 %v595_v43, 0.0  ;;  %v596_v47 = vadd.f32 %v2130_v38, %v584_v44 }
 0x11c   :  { %v2303_v48 = vpack.c.bf16 %v600_v46, %v600_v46  ;;  %v601_v49 = vmax.f32 %v596_v47, 0.0 }
 0x11d   :  { %v569_v51 = vpop.f32.mrb[16].mxu0 }
 0x11e   :  { %v612_v52 = vshrl.u32 %v2303_v48, 16  ;;  %v2304_v53 = vpack.c.bf16 %v601_v49, %v601_v49  ;;  %v585_v54 = vadd.f32 %v569_v51, %v436_v23  ;;  %v2503_v55 = vpop.f32.mrb[17].mxu0  ;;  %v615_v59 = vshll.u32 %v2303_v48, 16 }
 0x11f   :  { %v572_v57 = vpop.f32.mrb[18].mxu0 }
 0x120   :  { %v614_v58 = vrot.slane %v612_v52, 7  ;;  %v620_v60 = vshrl.u32 %v2304_v53, 16  ;;  %v597_v61 = vadd.f32 %v2130_v38, %v585_v54  ;;  %v2504_v62 = vpop.f32.mrb[19].mxu0  ;;  %v586_v3 = vadd.f32 %v572_v57, %v439_v27  ;;  %v687_v54 = vld [vmem:[#allocation3 + $0x10] sm:$0x3] }
 0x121   :  { %v623_v6 = vshll.u32 %v2304_v53, 16 }
 0x122   :  { %v617_v4 = vor.u32 %v615_v59, %v614_v58  ;;  %v622_v5 = vrot.slane %v620_v60, 7  ;;  %v602_v7 = vmax.f32 %v597_v61, 0.0  ;;  %v618_v9 = vrot.slane %v614_v58, 4 }
 0x123   :  { %v598_v12 = vadd.f32 %v2130_v38, %v586_v3 }
 0x124   :  { %v634_v13 = vsel %vm3125_vm11, %v617_v4, %v633_v2  ;;  %v625_v14 = vor.u32 %v623_v6, %v622_v5  ;;  %v627_v15 = vrot.slane %v622_v5, 4  ;;  %v2305_v16 = vpack.c.bf16 %v602_v7, %v602_v7 }
 0x125   :  { %635 = vst [vmem:[#allocation3] sm:$0xf] %v634_v13  ;;  %v603_v17 = vmax.f32 %v598_v12, 0.0  ;;  %v577_v18 = vpop.f32.mrb[20].mxu0 }
 0x126   :  { %v626_v19 = vsel %vm2959_vm14, %v618_v9, %v625_v14  ;;  %v639_v20 = vsel %vm3079_vm1, %v627_v15, %v638_v10  ;;  %v652_v21 = vshrl.u32 %v2305_v16, 16  ;;  %v2507_v22 = vpop.f32.mrb[21].mxu0  ;;  %v587_v24 = vadd.f32 %v577_v18, %v444_v33  ;;  %v2755_v10 = vld [vmem:[%s3476_s3] sm:$0xff]   ;;  %v2756_v14 = vld [vmem:[%s3476_s3 + $0x8] sm:$0xff]  }
 0x127   :  { %637 = vst.msk [vmem:[#allocation3 + $0x4] sm:$0xf] %vm631_vm10, %v626_v19  ;;  %640 = vst [vmem:[#allocation3 + $0x8] sm:$0x1] %v639_v20  ;;  %v2306_v23 = vpack.c.bf16 %v603_v17, %v603_v17  ;;  %v580_v25 = vpop.f32.mrb[22].mxu0  ;;  %v655_v27 = vshll.u32 %v2305_v16, 16 }
 0x128   :  { %v654_v26 = vrot.slane %v652_v21, 7  ;;  %v2508_v28 = vpop.f32.mrb[23].mxu0  ;;  %v599_v32 = vadd.f32 %v2130_v38, %v587_v24  ;;  %v2758_v21 = vld [vmem:[%s3476_s3 + $0x10] sm:$0xff]  }
 0x129   :  { %v660_v31 = vshrl.u32 %v2306_v23, 16  ;;  %v663_v37 = vshll.u32 %v2306_v23, 16  ;;  %v2759_v23 = vld [vmem:[%s3476_s3 + $0x18] sm:$0xff]   ;;  %v2762_v28 = vld [vmem:[%s3478_s5 + $0x8] sm:$0xff]  }
 0x12a   :  { %v657_v34 = vor.u32 %v655_v27, %v654_v26  ;;  %v604_v39 = vmax.f32 %v599_v32, 0.0  ;;  %v658_v33 = vrot.slane %v654_v26, 4  ;;  %v2761_v27 = vld [vmem:[%s3478_s5] sm:$0xff]  }
 0x12b   :  { %v662_v35 = vrot.slane %v660_v31, 7  ;;  %v2764_v31 = vld [vmem:[%s3478_s5 + $0x18] sm:$0xff]   ;;  %v2765_v32 = vld [vmem:[%s3478_s5 + $0x20] sm:$0xff]  }
 0x12c   :  { %v682_v40 = vsel %vm3137_vm13, %v657_v34, %v681_v30  ;;  %v2307_v43 = vpack.c.bf16 %v604_v39, %v604_v39  ;;  %v690_v44 = vld [vmem:[#allocation3] sm:$0xf]  ;;  %v2766_v34 = vld [vmem:[%s3478_s5 + $0x28] sm:$0xff]  }
 0x12d   :  { %683 = vst [vmem:[#allocation3 + $0x8] sm:$0xe] %v682_v40  ;;  %v665_v41 = vor.u32 %v663_v37, %v662_v35  ;;  %v667_v51 = vrot.slane %v662_v35, 4  ;;  %v929_v57 = vld [vmem:[#allocation3] sm:$0xe]  ;;  %v2767_v35 = vld [vmem:[%s3478_s5 + $0x40] sm:$0xff]  }
 0x12e   :  { %v691_v45 = vld [vmem:[#allocation3 + $0x4] sm:$0xf]  ;;  %v669_v47 = vshrl.u32 %v2307_v43, 16  ;;  %v672_v49 = vshll.u32 %v2307_v43, 16  ;;  %v2763_v30 = vld [vmem:[%s3478_s5 + $0x10] sm:$0xff]   ;;  %v2769_v39 = vld [vmem:[%s3478_s5 + $0x48] sm:$0xff]  }
 0x12f   :  { %v666_v46 = vsel %vm2959_vm14, %v658_v33, %v665_v41  ;;  %v2144_v48 = vcombine.low %v690_v44, %v691_v45  ;;  %v2170_v59 = vcombine.low %v929_v57, %v691_v45  ;;  %v2768_v37 = vld [vmem:[%s3478_s5 + $0x30] sm:$0xff]   ;;  %v2770_v40 = vld [vmem:[%s3478_s5 + $0x38] sm:$0xff]   ;;  %v2774_v43 = vld [vmem:[%s3478_s5 + $0x60] sm:$0xff]  }
 0x130   :  { %684 = vst.msk [vmem:[#allocation3 + $0xc] sm:$0xf] %vm631_vm10, %v666_v46  ;;  %v671_v38 = vrot.slane %v669_v47, 7  ;;  %v2771_v33 = vld [vmem:[%s3478_s5 + $0x50] sm:$0xff]   ;;  %v2773_v41 = vld [vmem:[%s3478_s5 + $0x58] sm:$0xff]   ;;  %v2775_v44 = vld [vmem:[%s3478_s5 + $0x68] sm:$0xff]  }
 0x131   :  { %v729_v55 = vshll.u32 %v2144_v48, 16  ;;  %v942_v2 = vrot.slane %v2170_v59, 1  ;;  %v727_v4 = vshrl.u32 %v2144_v48, 16  ;;  %v2776_v45 = vld [vmem:[%s3478_s5 + $0x70] sm:$0xff]   ;;  %v2778_v46 = vld [vmem:[%s3478_s5 + $0x78] sm:$0xff]  }
 0x132   :  { %v674_v52 = vor.u32 %v672_v49, %v671_v38 }
 0x133   :  { %v731_v62 = vrot.slane %v729_v55, 1 }
 0x134   :  { %v675_v58 = vsel %vm2959_vm14, %v667_v51, %v674_v52 }
 0x135   :  { %v688_v60 = vsel %vm3147_vm8, %v675_v58, %v687_v54  ;;  %v732_v7 = vor.u32 %v731_v62, %v727_v4 }
 0x136   :  { %689 = vst [vmem:[#allocation3 + $0x10] sm:$0x3] %v688_v60 }
 0x137   :  { %v2753_v61 = vld [vmem:[#allocation3 + $0x8] sm:$0xff]  }
 0x138   :  { %v943_v3 = vrot.slane %v2753_v61, 1  ;;  %v734_v5 = vshll.u32 %v2753_v61, 16  ;;  %v738_v16 = vshrl.u32 %v2753_v61, 16 }
 0x13a   :  { %v944_v6 = vsel %vm3512_vm7, %v942_v2, %v943_v3  ;;  %v736_v9 = vrot.slane %v734_v5, 1  ;;  %vm3515_vm7 = vmmov %vm3513_vm5 }
 0x13b   :  { %2558 = vmatmul.mubr.msk.bf16.vlgmr.msra.gmra.mrb[24].mxu0 %vm773_vm2, %v944_v6 }
 0x13c   :  { %v737_v12 = vsel %vm3513_vm5, %v732_v7, %v736_v9  ;;  %2561 = vmatprep.mubr.msk.bf16.mxu0 %vm2812_vm0, %v2811_v0  ;;  %v740_v19 = vor.u32 %v738_v16, %v736_v9  ;;  %2598 = vmatpush3.bf16.msra.mxu0 %v2761_v27  ;;  %v2807_v27 = vld [vmem:[%s3475_s0] sm:$0xff]  ;;  %vm1100_vm5 = vcmask 1045504  }
 0x13d   :  { %2518 = vmatmul.mubr.msk.bf16.vlgmr.msra.gmra.mrb[12].mxu1 %vm773_vm2, %v737_v12  ;;  %v2757_v13 = vld [vmem:[#allocation3 + $0x10] ss:$0 sps:$4 sm:$0x33]   ;;  %2599 = vmatprep.subr.bf16.mxu0 %v2811_v0 }
 0x13e   :  { %2530 = vmatpush3.bf16.msra.mxu1 %v2755_v10  ;;  %2521 = vmatprep.mubr.msk.bf16.mxu1 %vm2812_vm0, %v2811_v0  ;;  %v945_v15 = vrot.slane %v2757_v13, 1  ;;  %v742_v17 = vshll.u32 %v2757_v13, 16  ;;  %v746_v24 = vshrl.u32 %v2757_v13, 16  ;;  %v2760_v26 = vld [vmem:[#allocation3 + $0x10] ss:$0 sps:$4 sm:$0x11]  }
 0x13f   :  { %2531 = vmatprep.subr.bf16.mxu1 %v2811_v0 }
 0x140   :  { %v946_v18 = vsel %vm3514_vm12, %v943_v3, %v945_v15  ;;  %v744_v20 = vrot.slane %v742_v17, 1  ;;  %2600 = vmatpush3.bf16.msra.mxu0 %v2762_v28  ;;  %v2178_v17 = vld [vmem:[%s3479_s4] ss:$0 sm:$0xff] }
 0x141   :  { %2601 = vmatprep.subr.bf16.mxu0 %v2811_v0 }
 0x142   :  { %2532 = vmatpush3.bf16.msra.mxu1 %v2756_v14  ;;  %v745_v22 = vsel %vm3515_vm7, %v740_v19, %v744_v20  ;;  %v748_v25 = vor.u32 %v746_v24, %v744_v20 }
 0x143   :  { %2562 = vmatmul.mubr.msk.bf16.gmra.mrb[28].mxu0 %vm773_vm2, %v946_v18  ;;  %2533 = vmatprep.subr.bf16.mxu1 %v2811_v0 }
 0x144   :  { %2565 = vmatprep.mubr.msk.bf16.mxu0 %vm2812_vm0, %v2811_v0  ;;  %2602 = vmatpush3.bf16.msra.mxu0 %v2763_v30 }
 0x145   :  { %2522 = vmatmul.mubr.msk.bf16.gmra.mrb[16].mxu1 %vm773_vm2, %v745_v22  ;;  %2603 = vmatprep.subr.bf16.mxu0 %v2811_v0 }
 0x146   :  { %2534 = vmatpush3.bf16.msra.mxu1 %v2758_v21  ;;  %2525 = vmatprep.mubr.msk.bf16.mxu1 %vm2812_vm0, %v2811_v0 }
 0x147   :  { %2535 = vmatprep.subr.bf16.mxu1 %v2811_v0 }
 0x148   :  { %2604 = vmatpush3.bf16.msra.mxu0 %v2764_v31 }
 0x149   :  { %2605 = vmatprep.subr.bf16.mxu0 %v2811_v0 }
 0x14a   :  { %2536 = vmatpush3.bf16.msra.mxu1 %v2759_v23 }
 0x14b   :  { %2566 = vmatmul.mubr.msk.bf16.gmra.mrb[32].mxu0 %vm773_vm2, %v945_v15  ;;  %2569 = vmatprep.subr.bf16.mxu1 %v2811_v0 }
 0x14c   :  { %2613 = vmatprep.mubr.msk.bf16.mxu0 %vm2812_vm0, %v2811_v0  ;;  %2606 = vmatpush3.bf16.msra.mxu0 %v2765_v32 }
 0x14d   :  { %2526 = vmatmul.mubr.msk.bf16.gmra.mrb[20].mxu1 %vm773_vm2, %v748_v25  ;;  %2607 = vmatprep.subr.bf16.mxu0 %v2811_v0 }
 0x14e   :  { %2537 = vmatprep.mubr.msk.bf16.mxu1 %vm2812_vm0, %v2811_v0 }
 0x150   :  { %2608 = vmatpush3.bf16.msra.mxu0 %v2766_v34 }
 0x151   :  { %2609 = vmatprep.subr.bf16.mxu0 %v2811_v0 }
 0x154   :  { %2610 = vmatpush3.bf16.msra.mxu0 %v2768_v37  ;;  %v2808_v37 = vld [vmem:[%s3475_s0 + $0x8] sm:$0xff] }
 0x155   :  { %2538 = vmatmul.mubr.msk.bf16.vlgmr.msra.gmra.mrb[24].mxu1 %vm773_vm2, %v2144_v48  ;;  %2611 = vmatprep.subr.bf16.mxu0 %v2811_v0 }
 0x156   :  { %2541 = vmatprep.mubr.msk.bf16.mxu1 %vm2812_vm0, %v2811_v0  ;;  %2570 = vmatpush3.bf16.msra.mxu1 %v2767_v35 }
 0x157   :  { %2571 = vmatprep.subr.bf16.mxu1 %v2811_v0 }
 0x158   :  { %2612 = vmatpush3.bf16.msra.mxu0 %v2770_v40 }
 0x159   :  { %2653 = vmatprep.subr.bf16.mxu0 %v2811_v0 }
 0x15a   :  { %2572 = vmatpush3.bf16.msra.mxu1 %v2769_v39 }
 0x15b   :  { %2573 = vmatprep.subr.bf16.mxu1 %v2811_v0 }
 0x15d   :  { %2542 = vmatmul.mubr.msk.bf16.gmra.mrb[28].mxu1 %vm773_vm2, %v2753_v61 }
 0x15e   :  { %2545 = vmatprep.mubr.msk.bf16.mxu1 %vm2812_vm0, %v2811_v0  ;;  %2574 = vmatpush3.bf16.msra.mxu1 %v2771_v33 }
 0x15f   :  { %2575 = vmatprep.subr.bf16.mxu1 %v2811_v0 }
 0x162   :  { %2576 = vmatpush3.bf16.msra.mxu1 %v2773_v41 }
 0x163   :  { %2577 = vmatprep.subr.bf16.mxu1 %v2811_v0 }
 0x165   :  { %2546 = vmatmul.mubr.msk.bf16.gmra.mrb[32].mxu1 %vm773_vm2, %v2760_v26 }
 0x166   :  { %2585 = vmatprep.mubr.msk.bf16.mxu1 %vm2812_vm0, %v2811_v0  ;;  %2578 = vmatpush3.bf16.msra.mxu1 %v2774_v43 }
 0x167   :  { %2579 = vmatprep.subr.bf16.mxu1 %v2811_v0 }
 0x16a   :  { %2580 = vmatpush3.bf16.msra.mxu1 %v2775_v44 }
 0x16b   :  { %2581 = vmatprep.subr.bf16.mxu1 %v2811_v0 }
 0x16e   :  { %2582 = vmatpush3.bf16.msra.mxu1 %v2776_v45 }
 0x16f   :  { %2583 = vmatprep.subr.bf16.mxu1 %v2811_v0 }
 0x172   :  { %2584 = vmatpush3.bf16.msra.mxu1 %v2778_v46 }
 0x173   :  { %2625 = vmatprep.subr.bf16.mxu1 %v2811_v0 }
 0x20e   :  { %v1014_v47 = vpop.f32.mrb[24].mxu0 }
 0x20f   :  { %v2559_v48 = vpop.f32.mrb[25].mxu0 }
 0x210   :  { %v817_v38 = vpop.f32.mrb[12].mxu1  ;;  %v1017_v49 = vpop.f32.mrb[26].mxu0 }
 0x211   :  { %v2519_v51 = vpop.f32.mrb[13].mxu1  ;;  %v2560_v52 = vpop.f32.mrb[27].mxu0 }
 0x212   :  { %v820_v54 = vpop.f32.mrb[14].mxu1 }
 0x213   :  { %v2520_v55 = vpop.f32.mrb[15].mxu1 }
 0x216   :  { %v1022_v57 = vpop.f32.mrb[28].mxu0 }
 0x217   :  { %v2563_v58 = vpop.f32.mrb[29].mxu0 }
 0x218   :  { %v825_v59 = vpop.f32.mrb[16].mxu1  ;;  %v1025_v60 = vpop.f32.mrb[30].mxu0 }
 0x219   :  { %v2523_v61 = vpop.f32.mrb[17].mxu1  ;;  %v2564_v62 = vpop.f32.mrb[31].mxu0 }
 0x21a   :  { %v828_v2 = vpop.f32.mrb[18].mxu1  ;;  %v1092_v62 = vld [vmem:[#allocation2 + $0x8] sm:$0x1] }
 0x21b   :  { %v2524_v3 = vpop.f32.mrb[19].mxu1 }
 0x21e   :  { %v1030_v4 = vpop.f32.mrb[32].mxu0 }
 0x21f   :  { %v2567_v5 = vpop.f32.mrb[33].mxu0 }
 0x220   :  { %v833_v6 = vpop.f32.mrb[20].mxu1  ;;  %v1033_v7 = vpop.f32.mrb[34].mxu0 }
 0x221   :  { %v2527_v9 = vpop.f32.mrb[21].mxu1  ;;  %v2568_v10 = vpop.f32.mrb[35].mxu0 }
 0x222   :  { %v836_v12 = vpop.f32.mrb[22].mxu1 }
 0x223   :  { %v2528_v13 = vpop.f32.mrb[23].mxu1 }
 0x228   :  { %v907_v14 = vpop.f32.mrb[24].mxu1 }
 0x229   :  { %v908_v15 = vadd.f32 %v907_v14, %v817_v38  ;;  %v2539_v16 = vpop.f32.mrb[25].mxu1 }
 0x22a   :  { %v910_v18 = vpop.f32.mrb[26].mxu1 }
 0x22b   :  { %v1036_v19 = vadd.f32 %v1014_v47, %v908_v15  ;;  %v911_v20 = vadd.f32 %v910_v18, %v820_v54  ;;  %v2540_v21 = vpop.f32.mrb[27].mxu1 }
 0x22d   :  { %v1048_v22 = vadd.f32 %v2178_v17, %v1036_v19  ;;  %v1037_v23 = vadd.f32 %v1017_v49, %v911_v20  ;;  %v1088_v49 = vld [vmem:[#allocation2] sm:$0xf] }
 0x22f   :  { %v1053_v24 = vmax.f32 %v1048_v22, 0.0  ;;  %v1049_v25 = vadd.f32 %v2178_v17, %v1037_v23 }
 0x230   :  { %v915_v26 = vpop.f32.mrb[28].mxu1 }
 0x231   :  { %v1060_v28 = vadd.f32 %v2807_v27, %v1053_v24  ;;  %v1054_v30 = vmax.f32 %v1049_v25, 0.0  ;;  %v916_v31 = vadd.f32 %v915_v26, %v825_v59  ;;  %v2543_v32 = vpop.f32.mrb[29].mxu1  ;;  %v2810_v26 = vld [vmem:[%s3475_s0 + $0x18] sm:$0xff] }
 0x232   :  { %v918_v34 = vpop.f32.mrb[30].mxu1 }
 0x233   :  { %v2308_v35 = vpack.c.bf16 %v1060_v28, %v1060_v28  ;;  %v1061_v39 = vadd.f32 %v2808_v37, %v1054_v30  ;;  %v1038_v40 = vadd.f32 %v1022_v57, %v916_v31  ;;  %v919_v33 = vadd.f32 %v918_v34, %v828_v2  ;;  %v2544_v41 = vpop.f32.mrb[31].mxu1  ;;  %v1138_v30 = vld [vmem:[#allocation2 + $0x8] sm:$0xe] }
 0x235   :  { %v1069_v43 = vshrl.u32 %v2308_v35, 16  ;;  %v2309_v44 = vpack.c.bf16 %v1061_v39, %v1061_v39  ;;  %v1050_v45 = vadd.f32 %v2178_v17, %v1038_v40  ;;  %v1039_v46 = vadd.f32 %v1025_v60, %v919_v33 }
 0x236   :  { %v1072_v48 = vshll.u32 %v2308_v35, 16 }
 0x237   :  { %v1071_v47 = vrot.slane %v1069_v43, 7  ;;  %v1077_v38 = vshrl.u32 %v2309_v44, 16  ;;  %v1055_v51 = vmax.f32 %v1050_v45, 0.0  ;;  %v1051_v52 = vadd.f32 %v2178_v17, %v1039_v46 }
 0x238   :  { %v923_v54 = vpop.f32.mrb[32].mxu1  ;;  %v1080_v59 = vshll.u32 %v2309_v44, 16  ;;  %v1142_v44 = vld [vmem:[#allocation2 + $0x10] sm:$0x3] }
 0x239   :  { %v1074_v55 = vor.u32 %v1072_v48, %v1071_v47  ;;  %v1079_v58 = vrot.slane %v1077_v38, 7  ;;  %v2547_v61 = vpop.f32.mrb[33].mxu1  ;;  %v1056_v3 = vmax.f32 %v1051_v52, 0.0  ;;  %v924_v57 = vadd.f32 %v923_v54, %v833_v6 }
 0x23a   :  { %v926_v2 = vpop.f32.mrb[34].mxu1  ;;  %v1075_v5 = vrot.slane %v1071_v47, 4  ;;  %v1101_v12 = vrot.slane %v1055_v51, 2  ;;  %v2781_v61 = vld [vmem:[%s3478_s5 + $0x88] sm:$0xff]  }
 0x23b   :  { %v1089_v60 = vsel %vm2966_vm15, %v1074_v55, %v1088_v49  ;;  %v1082_v7 = vor.u32 %v1080_v59, %v1079_v58  ;;  %v1084_v9 = vrot.slane %v1079_v58, 4  ;;  %v2548_v10 = vpop.f32.mrb[35].mxu1  ;;  %v1102_v13 = vrot.slane %v1056_v3, 2  ;;  %v2783_v2 = vld [vmem:[%s3478_s5 + $0x90] sm:$0xff]  }
 0x23c   :  { %1090 = vst [vmem:[#allocation2] sm:$0xf] %v1089_v60  ;;  %v1040_v14 = vadd.f32 %v1030_v4, %v924_v57  ;;  %v2784_v60 = vld [vmem:[%s3478_s5 + $0x98] sm:$0xff]  }
 0x23d   :  { %v1083_v15 = vsel %vm2959_vm14, %v1075_v5, %v1082_v7  ;;  %v1093_v16 = vsel %vm2909_vm4, %v1084_v9, %v1092_v62  ;;  %v1103_v6 = vsel %vm1100_vm5, %v1101_v12, %v1102_v13  ;;  %vm3516_vm4 = vmmov %vm3515_vm7  ;;  %v2785_v9 = vld [vmem:[%s3478_s5 + $0xa0] sm:$0xff]   ;;  %v2786_v12 = vld [vmem:[%s3478_s5 + $0xa8] sm:$0xff]  }
 0x23e   :  { %1091 = vst [vmem:[#allocation2 + $0x4] sm:$0xf] %v1083_v15  ;;  %1094 = vst [vmem:[#allocation2 + $0x8] sm:$0x1] %v1093_v16  ;;  %v1052_v18 = vadd.f32 %v2178_v17, %v1040_v14  ;;  %v1108_v19 = vadd.f32 %v2809_v42, %v1103_v6  ;;  %v2788_v15 = vld [vmem:[%s3478_s5 + $0xb8] sm:$0xff]  }
 0x23f   :  { %vm3517_vm15 = vmmov %vm3516_vm4 }
 0x240   :  { %v1057_v20 = vmax.f32 %v1052_v18, 0.0  ;;  %v2310_v21 = vpack.c.bf16 %v1108_v19, %v1108_v19 }
 0x242   :  { %v1104_v22 = vrot.slane %v1057_v20, 2  ;;  %v1117_v4 = vshrl.u32 %v2310_v21, 16  ;;  %v1120_v23 = vshll.u32 %v2310_v21, 16  ;;  %v2790_v21 = vld [vmem:[%s3480_s7 + $0x20] sm:$0xff]  }
 0x243   :  { %v1145_v17 = vld [vmem:[#allocation2] sm:$0xf] }
 0x244   :  { %v1105_v24 = vsel %vm1100_vm5, %v1102_v13, %v1104_v22  ;;  %v1119_v25 = vrot.slane %v1117_v4, 6  ;;  %v1122_v11 = vrot.slane %v1120_v23, 7  ;;  %v2787_v13 = vld [vmem:[%s3478_s5 + $0xb0] sm:$0xff]   ;;  %v1437_v14 = vld [vmem:[#allocation2] sm:$0xe]  ;;  %v2793_v4 = vld [vmem:[%s3480_s7 + $0x48] sm:$0xff]  }
 0x245   :  { %v1109_v27 = vadd.f32 %v2810_v26, %v1105_v24  ;;  %v3289_v28 = vld [vmem:[#allocation2 + $0x4] sm:$0xf]  ;;  %v2791_v23 = vld [vmem:[%s3480_s7 + $0x28] sm:$0xff]   ;;  %v2795_v24 = vld [vmem:[%s3480_s7 + $0x50] sm:$0xff]  }
 0x246   :  { %v2201_v31 = vcombine.low %v1145_v17, %v3289_v28  ;;  %v1123_v32 = vor.u32 %v1122_v11, %v1119_v25  ;;  %v2237_v16 = vcombine.low %v1437_v14, %v3289_v28  ;;  %v2792_v22 = vld [vmem:[%s3480_s7 + $0x40] sm:$0xff]   ;;  %v2794_v25 = vld [vmem:[%s3480_s7 + $0x30] sm:$0xff]   ;;  %v2796_v11 = vld [vmem:[%s3480_s7 + $0x38] sm:$0xff]  }
 0x247   :  { %v2311_v34 = vpack.c.bf16 %v1109_v27, %v1109_v27  ;;  %v2797_v26 = vld [vmem:[%s3480_s7 + $0x58] sm:$0xff]  }
 0x248   :  { %2614 = vmatmul.mubr.bf16.vlgmr.msra.gmra.mrb[36].mxu0 %v2201_v31  ;;  %v1139_v35 = vsel %vm2985_vm6, %v1123_v32, %v1138_v30  ;;  %v1124_v41 = vrot.slane %v1123_v32, 4  ;;  %v1200_v47 = vshll.u32 %v2201_v31, 16  ;;  %v1198_v49 = vshrl.u32 %v2201_v31, 16  ;;  %vm3518_vm6 = vmmov %vm3514_vm12 }
 0x249   :  { %v1126_v37 = vshrl.u32 %v2311_v34, 16  ;;  %v1129_v39 = vshll.u32 %v2311_v34, 16  ;;  %2617 = vmatprep.mubr.msk.bf16.mxu0 %vm2812_vm0, %v2811_v0  ;;  %1140 = vst [vmem:[#allocation2 + $0x8] sm:$0xe] %v1139_v35  ;;  %v1458_v18 = vrot.slane %v2237_v16, 1  ;;  %2654 = vmatpush3.bf16.msra.mxu0 %v2790_v21 }
 0x24a   :  { %v1202_v38 = vrot.slane %v1200_v47, 1  ;;  %2655 = vmatprep.subr.bf16.mxu0 %v2811_v0 }
 0x24b   :  { %v1128_v40 = vrot.slane %v1126_v37, 6  ;;  %v1131_v33 = vrot.slane %v1129_v39, 7 }
 0x24c   :  { %v1203_v54 = vor.u32 %v1202_v38, %v1198_v49 }
 0x24d   :  { %v1132_v43 = vor.u32 %v1131_v33, %v1128_v40  ;;  %2656 = vmatpush3.bf16.msra.mxu0 %v2791_v23 }
 0x24e   :  { %2657 = vmatprep.subr.bf16.mxu0 %v2811_v0 }
 0x24f   :  { %v1133_v45 = vsel %vm2998_vm3, %v1124_v41, %v1132_v43  ;;  %v1134_v46 = vrot.slane %v1132_v43, 4  ;;  %vm3519_vm3 = vmmov %vm3518_vm6 }
 0x250   :  { %1141 = vst [vmem:[#allocation2 + $0xc] sm:$0xf] %v1133_v45 }
 0x251   :  { %v1143_v56 = vsel %vm3012_vm9, %v1134_v46, %v1142_v44  ;;  %2658 = vmatpush3.bf16.msra.mxu0 %v2794_v25  ;;  %vm3520_vm9 = vmmov %vm3519_vm3 }
 0x252   :  { %1144 = vst [vmem:[#allocation2 + $0x10] sm:$0x3] %v1143_v56  ;;  %2659 = vmatprep.subr.bf16.mxu0 %v2811_v0 }
 0x255   :  { %2660 = vmatpush3.bf16.msra.mxu0 %v2796_v11 }
 0x256   :  { %2673 = vmatprep.subr.bf16.mxu0 %v2811_v0 }
 0x257   :  { %v2777_v48 = vld [vmem:[#allocation2 + $0x8] sm:$0xff]  }
 0x258   :  { %2618 = vmatmul.mubr.bf16.gmra.mrb[40].mxu0 %v2777_v48  ;;  %v1205_v51 = vshll.u32 %v2777_v48, 16  ;;  %v1209_v62 = vshrl.u32 %v2777_v48, 16  ;;  %v1459_v6 = vrot.slane %v2777_v48, 1 }
 0x259   :  { %2621 = vmatprep.mubr.msk.bf16.mxu0 %vm2812_vm0, %v2811_v0  ;;  %v2782_v52 = vld [vmem:[#allocation2 + $0x10] ss:$0 sps:$4 sm:$0x33]  }
 0x25a   :  { %v1207_v55 = vrot.slane %v1205_v51, 1  ;;  %v1213_v58 = vshll.u32 %v2782_v52, 16  ;;  %v2780_v59 = vld [vmem:[#allocation2 + $0x10] ss:$0 sps:$4 sm:$0x11]   ;;  %v1217_v7 = vshrl.u32 %v2782_v52, 16  ;;  %v1460_v42 = vsel %vm3518_vm6, %v1458_v18, %v1459_v6 }
 0x25b   :  { %v1461_v19 = vrot.slane %v2782_v52, 1 }
 0x25c   :  { %v1208_v8 = vsel %vm3516_vm4, %v1203_v54, %v1207_v55  ;;  %v1211_v3 = vor.u32 %v1209_v62, %v1207_v55  ;;  %v1215_v57 = vrot.slane %v1213_v58, 1 }
 0x25d   :  { %2586 = vmatmul.mubr.bf16.vlgmr.msra.gmra.mrb[36].mxu1 %v1208_v8  ;;  %v1462_v20 = vsel %vm3519_vm3, %v1459_v6, %v1461_v19 }
 0x25e   :  { %2626 = vmatpush3.bf16.msra.mxu1 %v2779_v63  ;;  %2589 = vmatprep.mubr.msk.bf16.mxu1 %vm2812_vm0, %v2811_v0  ;;  %v1216_v5 = vsel %vm3517_vm15, %v1211_v3, %v1215_v57  ;;  %v1219_v10 = vor.u32 %v1217_v7, %v1215_v57 }
 0x25f   :  { %2627 = vmatprep.subr.bf16.mxu1 %v2811_v0 }
 0x260   :  { %2622 = vmatmul.mubr.bf16.gmra.mrb[44].mxu0 %v2780_v59 }
 0x261   :  { %2661 = vmatprep.mubr.msk.bf16.mxu0 %vm2812_vm0, %v2811_v0 }
 0x262   :  { %2628 = vmatpush3.bf16.msra.mxu1 %v2781_v61  ;;  %v2246_v61 = vld [vmem:[%s3481_s6] ss:$0 sm:$0xff] }
 0x263   :  { %2629 = vmatprep.subr.bf16.mxu1 %v2811_v0 }
 0x265   :  { %2590 = vmatmul.mubr.bf16.gmra.mrb[40].mxu1 %v1216_v5 }
 0x266   :  { %2630 = vmatpush3.bf16.msra.mxu1 %v2783_v2  ;;  %2593 = vmatprep.mubr.msk.bf16.mxu1 %vm2812_vm0, %v2811_v0 }
 0x267   :  { %2631 = vmatprep.subr.bf16.mxu1 %v2811_v0 }
 0x26a   :  { %2632 = vmatpush3.bf16.msra.mxu1 %v2784_v60 }
 0x26b   :  { %2633 = vmatprep.subr.bf16.mxu1 %v2811_v0 }
 0x26d   :  { %2594 = vmatmul.mubr.bf16.gmra.mrb[44].mxu1 %v1219_v10 }
 0x26e   :  { %2634 = vmatpush3.bf16.msra.mxu1 %v2785_v9  ;;  %2641 = vmatprep.mubr.msk.bf16.mxu1 %vm2812_vm0, %v2811_v0 }
 0x26f   :  { %2635 = vmatprep.subr.bf16.mxu1 %v2811_v0 }
 0x272   :  { %2636 = vmatpush3.bf16.msra.mxu1 %v2786_v12 }
 0x273   :  { %2637 = vmatprep.subr.bf16.mxu1 %v2811_v0 }
 0x276   :  { %2638 = vmatpush3.bf16.msra.mxu1 %v2787_v13 }
 0x277   :  { %2639 = vmatprep.subr.bf16.mxu1 %v2811_v0 }
 0x27a   :  { %2640 = vmatpush3.bf16.msra.mxu1 %v2788_v15 }
 0x27b   :  { %2693 = vmatprep.subr.bf16.mxu1 %v2811_v0 }
 0x27d   :  { %2642 = vmatmul.mubr.bf16.vlgmr.msra.gmra.mrb[48].mxu1 %v1460_v42 }
 0x27e   :  { %2645 = vmatprep.mubr.msk.bf16.mxu1 %vm2812_vm0, %v2811_v0  ;;  %2694 = vmatpush3.bf16.msra.mxu1 %v2792_v22 }
 0x27f   :  { %2695 = vmatprep.subr.bf16.mxu1 %v2811_v0 }
 0x282   :  { %2696 = vmatpush3.bf16.msra.mxu1 %v2793_v4 }
 0x283   :  { %2697 = vmatprep.subr.bf16.mxu1 %v2811_v0 }
 0x285   :  { %2646 = vmatmul.mubr.bf16.gmra.mrb[52].mxu1 %v1462_v20 }
 0x286   :  { %2649 = vmatprep.mubr.msk.bf16.mxu1 %vm2812_vm0, %v2811_v0  ;;  %2698 = vmatpush3.bf16.msra.mxu1 %v2795_v24 }
 0x287   :  { %2699 = vmatprep.subr.bf16.mxu1 %v2811_v0 }
 0x28a   :  { %2700 = vmatpush3.bf16.msra.mxu1 %v2797_v26 }
 0x28d   :  { %2650 = vmatmul.mubr.bf16.gmra.mrb[56].mxu1 %v1461_v19 }
 0x28e   :  { %2701 = vmatprep.mubr.msk.bf16.mxu1 %vm2812_vm0, %v2811_v0 }
 0x31b   :  { %v1415_v27 = vpop.f32.mrb[36].mxu0 }
 0x31c   :  { %v2615_v17 = vpop.f32.mrb[37].mxu0 }
 0x31d   :  { %v1418_v28 = vpop.f32.mrb[38].mxu0 }
 0x31e   :  { %v2616_v30 = vpop.f32.mrb[39].mxu0 }
 0x32b   :  { %v1423_v31 = vpop.f32.mrb[40].mxu0 }
 0x32c   :  { %v2619_v32 = vpop.f32.mrb[41].mxu0 }
 0x32d   :  { %v1426_v34 = vpop.f32.mrb[42].mxu0 }
 0x32e   :  { %v2620_v35 = vpop.f32.mrb[43].mxu0 }
 0x330   :  { %v1305_v37 = vpop.f32.mrb[36].mxu1 }
 0x331   :  { %v1416_v39 = vadd.f32 %v1415_v27, %v1305_v37  ;;  %v2587_v40 = vpop.f32.mrb[37].mxu1  ;;  %v1618_v27 = vld [vmem:[#allocation3] sm:$0xf] }
 0x332   :  { %v1308_v33 = vpop.f32.mrb[38].mxu1 }
 0x333   :  { %v1419_v41 = vadd.f32 %v1418_v28, %v1308_v33  ;;  %v2588_v43 = vpop.f32.mrb[39].mxu1  ;;  %v1431_v44 = vpop.f32.mrb[44].mxu0 }
 0x334   :  { %v2623_v45 = vpop.f32.mrb[45].mxu0 }
 0x335   :  { %v1434_v46 = vpop.f32.mrb[46].mxu0 }
 0x336   :  { %v2624_v56 = vpop.f32.mrb[47].mxu0 }
 0x338   :  { %v1313_v47 = vpop.f32.mrb[40].mxu1 }
 0x339   :  { %v1424_v48 = vadd.f32 %v1423_v31, %v1313_v47  ;;  %v2591_v38 = vpop.f32.mrb[41].mxu1 }
 0x33a   :  { %v1316_v49 = vpop.f32.mrb[42].mxu1 }
 0x33b   :  { %v1427_v51 = vadd.f32 %v1426_v34, %v1316_v49  ;;  %v2592_v52 = vpop.f32.mrb[43].mxu1  ;;  %v1622_v34 = vld [vmem:[#allocation3 + $0x8] sm:$0x1]  ;;  %v1663_v49 = vld [vmem:[#allocation3 + $0x8] sm:$0xe] }
 0x340   :  { %v1321_v54 = vpop.f32.mrb[44].mxu1 }
 0x341   :  { %v1432_v55 = vadd.f32 %v1431_v44, %v1321_v54  ;;  %v2595_v63 = vpop.f32.mrb[45].mxu1 }
 0x342   :  { %v1324_v8 = vpop.f32.mrb[46].mxu1 }
 0x343   :  { %v2596_v58 = vpop.f32.mrb[47].mxu1 }
 0x350   :  { %v1548_v59 = vpop.f32.mrb[48].mxu1 }
 0x351   :  { %v1570_v62 = vadd.f32 %v1548_v59, %v1416_v39  ;;  %v2643_v3 = vpop.f32.mrb[49].mxu1 }
 0x352   :  { %v1551_v57 = vpop.f32.mrb[50].mxu1 }
 0x353   :  { %v1582_v2 = vadd.f32 %v2246_v61, %v1570_v62  ;;  %v1571_v5 = vadd.f32 %v1551_v57, %v1419_v41  ;;  %v2644_v60 = vpop.f32.mrb[51].mxu1 }
 0x355   :  { %v1587_v7 = vmax.f32 %v1582_v2, 0.0  ;;  %v1583_v9 = vadd.f32 %v2246_v61, %v1571_v5 }
 0x357   :  { %v2312_v10 = vpack.c.bf16 %v1587_v7, %v1587_v7  ;;  %v1588_v12 = vmax.f32 %v1583_v9, 0.0 }
 0x358   :  { %v1556_v13 = vpop.f32.mrb[52].mxu1 }
 0x359   :  { %v1599_v14 = vshrl.u32 %v2312_v10, 16  ;;  %v2313_v15 = vpack.c.bf16 %v1588_v12, %v1588_v12  ;;  %v1572_v16 = vadd.f32 %v1556_v13, %v1424_v48  ;;  %v2647_v6 = vpop.f32.mrb[53].mxu1  ;;  %v1602_v19 = vshll.u32 %v2312_v10, 16  ;;  %v1667_v10 = vld [vmem:[#allocation3 + $0x10] sm:$0x3] }
 0x35a   :  { %v1559_v18 = vpop.f32.mrb[54].mxu1 }
 0x35b   :  { %v1601_v42 = vrot.slane %v1599_v14, 7  ;;  %v1607_v20 = vshrl.u32 %v2313_v15, 16  ;;  %v1584_v21 = vadd.f32 %v2246_v61, %v1572_v16  ;;  %v2648_v22 = vpop.f32.mrb[55].mxu1  ;;  %v1573_v4 = vadd.f32 %v1559_v18, %v1427_v51 }
 0x35c   :  { %v1610_v25 = vshll.u32 %v2313_v15, 16 }
 0x35d   :  { %v1604_v23 = vor.u32 %v1602_v19, %v1601_v42  ;;  %v1609_v24 = vrot.slane %v1607_v20, 7  ;;  %v1589_v11 = vmax.f32 %v1584_v21, 0.0  ;;  %v1605_v26 = vrot.slane %v1601_v42, 4 }
 0x35e   :  { %v1585_v17 = vadd.f32 %v2246_v61, %v1573_v4  ;;  %v2802_v4 = vld [vmem:[%s3480_s7 + $0x8] sm:$0xff]  }
 0x35f   :  { %v1619_v28 = vsel %vm3125_vm11, %v1604_v23, %v1618_v27  ;;  %v1612_v30 = vor.u32 %v1610_v25, %v1609_v24  ;;  %v1614_v31 = vrot.slane %v1609_v24, 4  ;;  %v2314_v32 = vpack.c.bf16 %v1589_v11, %v1589_v11 }
 0x360   :  { %1620 = vst [vmem:[#allocation3] sm:$0xf] %v1619_v28  ;;  %v1590_v35 = vmax.f32 %v1585_v17, 0.0  ;;  %v1564_v37 = vpop.f32.mrb[56].mxu1  ;;  %v2804_v17 = vld [vmem:[%s3480_s7 + $0x10] sm:$0xff]  }
 0x361   :  { %v1613_v39 = vsel %vm2959_vm14, %v1605_v26, %v1612_v30  ;;  %v1623_v40 = vsel %vm3079_vm1, %v1614_v31, %v1622_v34  ;;  %v1636_v33 = vshrl.u32 %v2314_v32, 16  ;;  %v2651_v41 = vpop.f32.mrb[57].mxu1  ;;  %v1574_v43 = vadd.f32 %v1564_v37, %v1432_v55  ;;  %vm3522_vm1 = vmmov %vm3519_vm3  ;;  %v2805_v30 = vld [vmem:[%s3480_s7 + $0x18] sm:$0xff]  }
 0x362   :  { %1621 = vst.msk [vmem:[#allocation3 + $0x4] sm:$0xf] %vm631_vm10, %v1613_v39  ;;  %1624 = vst [vmem:[#allocation3 + $0x8] sm:$0x1] %v1623_v40  ;;  %v2315_v1 = vpack.c.bf16 %v1590_v35, %v1590_v35  ;;  %v1567_v44 = vpop.f32.mrb[58].mxu1  ;;  %v1639_v46 = vshll.u32 %v2314_v32, 16 }
 0x363   :  { %v1638_v45 = vrot.slane %v1636_v33, 7  ;;  %v2652_v56 = vpop.f32.mrb[59].mxu1  ;;  %v1586_v48 = vadd.f32 %v2246_v61, %v1574_v43 }
 0x364   :  { %v1644_v47 = vshrl.u32 %v2315_v1, 16  ;;  %v1647_v52 = vshll.u32 %v2315_v1, 16 }
 0x365   :  { %v1641_v38 = vor.u32 %v1639_v46, %v1638_v45  ;;  %v1591_v54 = vmax.f32 %v1586_v48, 0.0  ;;  %v1642_v63 = vrot.slane %v1638_v45, 4 }
 0x366   :  { %v1646_v51 = vrot.slane %v1644_v47, 7 }
 0x367   :  { %v1664_v50 = vsel %vm3137_vm13, %v1641_v38, %v1663_v49  ;;  %v2316_v58 = vpack.c.bf16 %v1591_v54, %v1591_v54  ;;  %v1670_v59 = vld [vmem:[#allocation3] sm:$0xf] }
 0x368   :  { %1665 = vst [vmem:[#allocation3 + $0x8] sm:$0xe] %v1664_v50  ;;  %v1649_v8 = vor.u32 %v1647_v52, %v1646_v51  ;;  %v1651_v5 = vrot.slane %v1646_v51, 4  ;;  %v1908_v29 = vld [vmem:[#allocation3] sm:$0xe] }
 0x369   :  { %v1671_v55 = vld [vmem:[#allocation3 + $0x4] sm:$0xf]  ;;  %v1653_v3 = vshrl.u32 %v2316_v58, 16  ;;  %v1656_v2 = vshll.u32 %v2316_v58, 16 }
 0x36a   :  { %v1650_v62 = vsel %vm2959_vm14, %v1642_v63, %v1649_v8  ;;  %v2260_v57 = vcombine.low %v1670_v59, %v1671_v55  ;;  %v2286_v12 = vcombine.low %v1908_v29, %v1671_v55 }
 0x36b   :  { %1666 = vst.msk [vmem:[#allocation3 + $0xc] sm:$0xf] %vm631_vm10, %v1650_v62  ;;  %v1655_v61 = vrot.slane %v1653_v3, 7  ;;  %vm3523_vm10 = vmmov %vm3516_vm4  ;;  %v2294_v3 = vld [vmem:[%s3482_s8] ss:$0 sm:$0xff] }
 0x36c   :  { %v1709_v7 = vshll.u32 %v2260_v57, 16  ;;  %v1921_v16 = vrot.slane %v2286_v12, 1  ;;  %v1707_v18 = vshrl.u32 %v2260_v57, 16 }
 0x36d   :  { %v1658_v60 = vor.u32 %v1656_v2, %v1655_v61 }
 0x36e   :  { %v1711_v15 = vrot.slane %v1709_v7, 1 }
 0x36f   :  { %v1659_v9 = vsel %vm2959_vm14, %v1651_v5, %v1658_v60  ;;  %vm3521_vm14 = vmmov %vm3516_vm4  ;;  %v2032_v60 = vld [vmem:[%s3475_s0] sm:$0xff] }
 0x370   :  { %v1668_v13 = vsel %vm3147_vm8, %v1659_v9, %v1667_v10  ;;  %v1712_v20 = vor.u32 %v1711_v15, %v1707_v18  ;;  %v2033_v9 = vld [vmem:[%s3475_s0 + $0x8] sm:$0xff] }
 0x371   :  { %1669 = vst [vmem:[#allocation3 + $0x10] sm:$0x3] %v1668_v13 }
 0x372   :  { %v2799_v14 = vld [vmem:[#allocation3 + $0x8] sm:$0xff]  }
 0x373   :  { %v1922_v6 = vrot.slane %v2799_v14, 1  ;;  %v1714_v42 = vshll.u32 %v2799_v14, 16  ;;  %v1718_v24 = vshrl.u32 %v2799_v14, 16 }
 0x375   :  { %v1923_v19 = vsel %vm3520_vm9, %v1921_v16, %v1922_v6  ;;  %v1716_v21 = vrot.slane %v1714_v42, 1 }
 0x376   :  { %2702 = vmatmul.mubr.msk.bf16.vlgmr.msra.gmra.mrb[60].mxu1 %vm773_vm2, %v1923_v19 }
 0x377   :  { %v1717_v53 = vsel %vm3521_vm14, %v1712_v20, %v1716_v21  ;;  %2705 = vmatprep.mubr.msk.bf16.mxu1 %vm2812_vm0, %v2811_v0  ;;  %v1720_v26 = vor.u32 %v1718_v24, %v1716_v21  ;;  %v2295_v24 = vld [vmem:[%s3475_s0 + $0x10] sm:$0xff] }
 0x378   :  { %2662 = vmatmul.mubr.msk.bf16.vlgmr.msra.gmra.mrb[48].mxu0 %vm773_vm2, %v1717_v53  ;;  %v2803_v22 = vld [vmem:[#allocation3 + $0x10] ss:$0 sps:$4 sm:$0x33]  }
 0x379   :  { %2674 = vmatpush3.bf16.msra.mxu0 %v2801_v36  ;;  %2665 = vmatprep.mubr.msk.bf16.mxu0 %vm2812_vm0, %v2811_v0  ;;  %v1924_v23 = vrot.slane %v2803_v22, 1  ;;  %v1722_v25 = vshll.u32 %v2803_v22, 16  ;;  %v1726_v31 = vshrl.u32 %v2803_v22, 16  ;;  %v2806_v34 = vld [vmem:[#allocation3 + $0x10] ss:$0 sps:$4 sm:$0x11]  }
 0x37a   :  { %2675 = vmatprep.subr.bf16.mxu0 %v2811_v0 }
 0x37b   :  { %v1925_v11 = vsel %vm3522_vm1, %v1922_v6, %v1924_v23  ;;  %v1724_v27 = vrot.slane %v1722_v25, 1 }
 0x37d   :  { %2676 = vmatpush3.bf16.msra.mxu0 %v2802_v4  ;;  %v1725_v28 = vsel %vm3523_vm10, %v1720_v26, %v1724_v27  ;;  %v1728_v32 = vor.u32 %v1726_v31, %v1724_v27 }
 0x37e   :  { %2706 = vmatmul.mubr.msk.bf16.gmra.mrb[64].mxu1 %vm773_vm2, %v1925_v11  ;;  %2677 = vmatprep.subr.bf16.mxu0 %v2811_v0 }
 0x37f   :  { %2709 = vmatprep.mubr.msk.bf16.mxu1 %vm2812_vm0, %v2811_v0 }
 0x380   :  { %2666 = vmatmul.mubr.msk.bf16.gmra.mrb[52].mxu0 %vm773_vm2, %v1725_v28 }
 0x381   :  { %2678 = vmatpush3.bf16.msra.mxu0 %v2804_v17  ;;  %2669 = vmatprep.mubr.msk.bf16.mxu0 %vm2812_vm0, %v2811_v0 }
 0x382   :  { %2679 = vmatprep.subr.bf16.mxu0 %v2811_v0 }
 0x385   :  { %2680 = vmatpush3.bf16.msra.mxu0 %v2805_v30 }
 0x386   :  { %2710 = vmatmul.mubr.msk.bf16.gmra.mrb[68].mxu1 %vm773_vm2, %v1924_v23 }
 0x388   :  { %2670 = vmatmul.mubr.msk.bf16.gmra.mrb[56].mxu0 %vm773_vm2, %v1728_v32 }
 0x389   :  { %2681 = vmatprep.mubr.msk.bf16.mxu0 %vm2812_vm0, %v2811_v0 }
 0x390   :  { %2682 = vmatmul.mubr.msk.bf16.vlgmr.msra.gmra.mrb[60].mxu0 %vm773_vm2, %v2260_v57 }
 0x391   :  { %2685 = vmatprep.mubr.msk.bf16.mxu0 %vm2812_vm0, %v2811_v0 }
 0x398   :  { %2686 = vmatmul.mubr.msk.bf16.gmra.mrb[64].mxu0 %vm773_vm2, %v2799_v14 }
 0x399   :  { %2689 = vmatprep.mubr.msk.bf16.mxu0 %vm2812_vm0, %v2811_v0 }
 0x3a0   :  { %2690 = vmatmul.mubr.msk.bf16.gmra.mrb[68].mxu0 %vm773_vm2, %v2806_v34 }
 0x449   :  { %v1993_v35 = vpop.f32.mrb[60].mxu1 }
 0x44a   :  { %v2703_v37 = vpop.f32.mrb[61].mxu1 }
 0x44b   :  { %v1796_v39 = vpop.f32.mrb[48].mxu0  ;;  %v1996_v40 = vpop.f32.mrb[62].mxu1 }
 0x44c   :  { %v2663_v33 = vpop.f32.mrb[49].mxu0  ;;  %v2704_v41 = vpop.f32.mrb[63].mxu1 }
 0x44d   :  { %v1799_v1 = vpop.f32.mrb[50].mxu0 }
 0x44e   :  { %v2664_v43 = vpop.f32.mrb[51].mxu0 }
 0x451   :  { %v2001_v44 = vpop.f32.mrb[64].mxu1 }
 0x452   :  { %v2707_v45 = vpop.f32.mrb[65].mxu1 }
 0x453   :  { %v1804_v46 = vpop.f32.mrb[52].mxu0  ;;  %v2004_v56 = vpop.f32.mrb[66].mxu1 }
 0x454   :  { %v2667_v47 = vpop.f32.mrb[53].mxu0  ;;  %v2708_v48 = vpop.f32.mrb[67].mxu1 }
 0x455   :  { %v1807_v38 = vpop.f32.mrb[54].mxu0 }
 0x456   :  { %v2668_v49 = vpop.f32.mrb[55].mxu0 }
 0x459   :  { %v2009_v0 = vpop.f32.mrb[68].mxu1 }
 0x45a   :  { %v2711_v51 = vpop.f32.mrb[69].mxu1 }
 0x45b   :  { %v1812_v52 = vpop.f32.mrb[56].mxu0  ;;  %v2012_v54 = vpop.f32.mrb[70].mxu1 }
 0x45c   :  { %v2671_v50 = vpop.f32.mrb[57].mxu0  ;;  %v2712_v63 = vpop.f32.mrb[71].mxu1 }
 0x45d   :  { %v1815_v8 = vpop.f32.mrb[58].mxu0 }
 0x45e   :  { %v2672_v58 = vpop.f32.mrb[59].mxu0 }
 0x463   :  { %v1886_v59 = vpop.f32.mrb[60].mxu0 }
 0x464   :  { %v1887_v55 = vadd.f32 %v1886_v59, %v1796_v39  ;;  %v2683_v62 = vpop.f32.mrb[61].mxu0 }
 0x465   :  { %v1889_v57 = vpop.f32.mrb[62].mxu0 }
 0x466   :  { %v2015_v61 = vadd.f32 %v1993_v35, %v1887_v55  ;;  %v1890_v2 = vadd.f32 %v1889_v57, %v1799_v1  ;;  %v2684_v5 = vpop.f32.mrb[63].mxu0  ;;  %v2296_v35 = vld [vmem:[%s3475_s0 + $0x18] sm:$0xff] }
 0x468   :  { %v2027_v7 = vadd.f32 %v2294_v3, %v2015_v61  ;;  %v2016_v29 = vadd.f32 %v1996_v40, %v1890_v2 }
 0x46a   :  { %v2034_v10 = vadd.f32 %v2032_v60, %v2027_v7  ;;  %v2028_v12 = vadd.f32 %v2294_v3, %v2016_v29 }
 0x46b   :  { %v1894_v13 = vpop.f32.mrb[64].mxu0 }
 0x46c   :  { %v2036_v14 = vmax.f32 %v2034_v10, 0.0  ;;  %v2035_v15 = vadd.f32 %v2033_v9, %v2028_v12  ;;  %v1895_v16 = vadd.f32 %v1894_v13, %v1804_v46  ;;  %v2687_v6 = vpop.f32.mrb[65].mxu0 }
 0x46d   :  { %v1897_v18 = vpop.f32.mrb[66].mxu0 }
 0x46e   :  { %2038 = vst [vmem:[%s3483_s9] sm:$0xff] %v2036_v14  ;;  %v2037_v42 = vmax.f32 %v2035_v15, 0.0  ;;  %v2017_v19 = vadd.f32 %v2001_v44, %v1895_v16  ;;  %v1898_v20 = vadd.f32 %v1897_v18, %v1807_v38  ;;  %v2688_v21 = vpop.f32.mrb[67].mxu0 }
 0x470   :  { %2039 = vst [vmem:[%s3483_s9 + $0x8] sm:$0xff] %v2037_v42  ;;  %v2029_v36 = vadd.f32 %v2294_v3, %v2017_v19  ;;  %v2018_v53 = vadd.f32 %v2004_v56, %v1898_v20 }
 0x472   :  { %v2030_v22 = vadd.f32 %v2294_v3, %v2018_v53  ;;  %v2045_v23 = vrot.slane %v2029_v36, 2 }
 0x473   :  { %v1902_v4 = vpop.f32.mrb[68].mxu0 }
 0x474   :  { %v2046_v25 = vrot.slane %v2030_v22, 2  ;;  %v1903_v11 = vadd.f32 %v1902_v4, %v1812_v52  ;;  %v2691_v26 = vpop.f32.mrb[69].mxu0 }
 0x475   :  { %v1905_v27 = vpop.f32.mrb[70].mxu0 }
 0x476   :  { %v2047_v17 = vsel %vm1100_vm5, %v2045_v23, %v2046_v25  ;;  %v2019_v28 = vadd.f32 %v2009_v0, %v1903_v11  ;;  %v2692_v30 = vpop.f32.mrb[71].mxu0 }
 0x477   :  { %v2052_v31 = vadd.f32 %v2295_v24, %v2047_v17 }
 0x478   :  { %v2031_v32 = vadd.f32 %v2294_v3, %v2019_v28 }
 0x479   :  { %v2054_v34 = vmax.f32 %v2052_v31, 0.0 }
 0x47a   :  { %v2048_v37 = vrot.slane %v2031_v32, 2 }
 0x47b   :  { %2297 = vst [vmem:[%s3483_s9 + $0x10] sm:$0xff] %v2054_v34 }
 0x47c   :  { %v2049_v39 = vsel %vm1100_vm5, %v2046_v25, %v2048_v37 }
 0x47d   :  { %v2053_v40 = vadd.f32 %v2296_v35, %v2049_v39 }
 0x47f   :  { %v2055_v33 = vmax.f32 %v2053_v40, 0.0 }
 0x481   :  { %2298 = vst [vmem:[%s3483_s9 + $0x18] sm:$0xff] %v2055_v33 }

</bundles_post_ra>
